<compile_context>
chip_gen: v7x
topology: tpu7x:2x2x1
jax: 0.10.0
libtpu: 0.0.40
codegen_flags: <defaults>
</compile_context>

<pallas_src>
import functools

import jax
import jax.numpy as jnp
import numpy as np
from jax import lax
from jax.experimental import pallas as pl
from jax.experimental.pallas import tpu as pltpu

C_IN = 3                  # fixed by nn.Conv2d(in_channels=3, ...)
K_TAPS = 25               # 5x5 neighborhood == conv output channels
P_DIM = C_IN * K_TAPS     # 75
_SPAD = 128               # leading zero lanes so tap offsets (down to -2) stay in bounds
_TAIL = 128               # trailing scratch lanes so the largest tap slice stays in bounds
                          # (those lanes only feed output columns that are sliced away)


def _round_up(a, b):
    return (a + b - 1) // b * b


def _cdiv(a, b):
    return (a + b - 1) // b


def _horder_kernel(w_ref, b_ref, xm_ref, xh_ref, o_ref, strip_ref, pat_ref, coef_ref,
                   *, tile_h, wp, chunk, mxu_dtype):
    """One (batch, row-tile) step.

    w_ref:    (25, 75)              conv weights, column p = 3*(5*hh+ww) + c
    b_ref:    (25, 1)               conv bias
    xm_ref:   (1, 3, tw)            zero-embedded x, rows [n*tile_h, (n+1)*tile_h) flattened
    xh_ref:   (1, 3, 4*wp)          4-row bottom halo (rows [(n+1)*tile_h, (n+1)*tile_h+4))
    o_ref:    (1, 3, tw)            output (padded-width layout, sliced by the wrapper)
    strip_ref:(3, _SPAD+tw+4*wp+_TAIL)  VMEM scratch: haloed flat row strip
    pat_ref:  (75, tw)              VMEM scratch: 25 shifted taps x 3 channels
    coef_ref: (25, tw)              VMEM scratch: spatially varying coefficients
    """
    tw = tile_h * wp
    halo = 4 * wp

    # ---- assemble the haloed row strip (lane axis = row-major padded pixels) ----
    strip_ref[:, :_SPAD] = jnp.zeros((C_IN, _SPAD), dtype=jnp.float32)
    strip_ref[:, _SPAD:_SPAD + tw] = xm_ref[0]                       # current tile rows
    strip_ref[:, _SPAD + tw:_SPAD + tw + halo] = xh_ref[0]           # 4 halo rows
    strip_ref[:, _SPAD + tw + halo:] = jnp.zeros((C_IN, _TAIL), dtype=jnp.float32)

    # ---- build the 25 shifted taps in VMEM (row p = 3*k + channel) --------------
    for k in range(K_TAPS):
        hh, ww = k // 5, k % 5
        d = hh * wp + (ww - 2)                                       # flat pixel offset of tap k
        pat_ref[3 * k:3 * k + 3, :] = strip_ref[:, _SPAD + d:_SPAD + d + tw]

    # ---- spatially varying coefficients: 5x5 conv == (25,75)x(75,tw) on the MXU --
    w = w_ref[...]
    pat = pat_ref[...]
    if mxu_dtype is not None:
        w = w.astype(mxu_dtype)
        pat = pat.astype(mxu_dtype)
    coef_ref[...] = (jnp.dot(w, pat, preferred_element_type=jnp.float32)
                     + b_ref[...])                                   # (25, tw)

    # ---- dynamic filtering + residual: lane-chunked so the accumulator lives in ----
    # ---- vregs and the output is written exactly once per chunk (no spills).   ----
    n_chunks = tw // chunk

    def body(i, carry):
        j = pl.multiple_of(i * chunk, chunk)
        cs = pl.ds(j, chunk)
        z = pat_ref[3 * 12:3 * 12 + 3, cs]          # centre tap (hh=ww=2) == original x
        for k in range(K_TAPS):                     # 25-tap MAC, fully unrolled
            z = z + pat_ref[3 * k:3 * k + 3, cs] * coef_ref[k:k + 1, cs]
        o_ref[0, :, cs] = z.astype(o_ref.dtype)
        return carry

    lax.fori_loop(0, n_chunks, body, 0)


def high_order_forward(x, conv_w, conv_b, *, mxu_dtype=None, max_tile_lanes=32768):
    """x: (B, 3, H, W) f32; conv_w: (25, 3, 5, 5); conv_b: (25,)."""
    B, C, H, W = x.shape
    assert C == C_IN and conv_w.shape == (K_TAPS, C_IN, 5, 5) and conv_b.shape == (K_TAPS,)
    x = x.astype(jnp.float32)

    # Padded width: >= W+4 (conv halo); multiple of 32 so the 4-row halo block is a
    # multiple of 128 lanes.  Round to 128 (vreg-aligned hh*wp tap offsets) when the
    # lane inflation is <= 12.5%.
    wp = _round_up(W + 4, 32)
    wp128 = _round_up(W + 4, 128)
    if wp128 * 8 <= wp * 9:
        wp = wp128

    # Row tiling: tile_h rows flattened onto the lane axis per grid step.  Grow the
    # tile to amortize per-step pipeline overhead, but keep >=2 grid steps (>=4 when
    # B > 1) so a 2-TensorCore part (v7x) stays busy.
    min_steps = 2 if B == 1 else 4
    h8 = _round_up(H, 8)
    tile_h = 8
    while (tile_h * 2 * wp <= max_tile_lanes and tile_h * 2 <= h8
           and B * _cdiv(H, tile_h * 2) >= min_steps):
        tile_h *= 2
    h_t = _round_up(H, tile_h)
    n_tiles = h_t // tile_h
    rows = h_t + 4                     # 4 extra zero/bottom-pad rows feed the last tile's halo
    tw = tile_h * wp                   # lanes per tile (multiple of 256)
    halo = 4 * wp
    chunk = 512 if tw % 512 == 0 else 256

    # Zero-embedded input: data at rows [2, 2+H), cols [2, 2+W)  (== ConstantPad2d(2)).
    # TODO(synk): fold this padding and the final slice into the kernel I/O to remove the
    #             remaining wrapper-side HBM round trips (review item #10).
    x_work = jnp.zeros((B, C_IN, rows, wp), jnp.float32)
    x_work = x_work.at[:, :, 2:2 + H, 2:2 + W].set(x)
    x_flat = x_work.reshape(B, C_IN, rows * wp)

    # Weight layout p = 3*(5*hh+ww) + c  (tap-major, channel-minor).
    w_mat = conv_w.transpose(0, 2, 3, 1).reshape(K_TAPS, P_DIM).astype(jnp.float32)
    b_col = conv_b.reshape(K_TAPS, 1).astype(jnp.float32)

    kernel = functools.partial(_horder_kernel, tile_h=tile_h, wp=wp, chunk=chunk,
                               mxu_dtype=mxu_dtype)

    # Explicit VMEM budget (lifts v5e's 16 MiB default; stays well under v7x's 64 MiB).
    strip_lanes = _SPAD + tw + halo + _TAIL
    est_vmem = 4 * (C_IN * strip_lanes + P_DIM * tw + K_TAPS * tw
                    + 2 * (C_IN * tw + C_IN * halo + K_TAPS * (P_DIM + 1))
                    + 2 * C_IN * tw)
    vmem_limit = int(min(48 << 20, max(32 << 20, 2 * est_vmem)))

    lanes_total = B * h_t * wp
    flops = (2 * K_TAPS * P_DIM + 2 * K_TAPS * C_IN) * lanes_total
    bytes_accessed = int(x_flat.size * 4 * (1.0 + 4.0 / tile_h)
                         + lanes_total * C_IN * 4 + w_mat.size * 4)

    out_flat = pl.pallas_call(
        kernel,
        out_shape=jax.ShapeDtypeStruct((B, C_IN, h_t * wp), jnp.float32),
        grid_spec=pltpu.PrefetchScalarGridSpec(
            num_scalar_prefetch=0,
            grid=(B, n_tiles),
            in_specs=[
                pl.BlockSpec((K_TAPS, P_DIM), lambda b, n: (0, 0)),
                pl.BlockSpec((K_TAPS, 1), lambda b, n: (0, 0)),
                # current tile rows (flattened, lane-dense)
                pl.BlockSpec((1, C_IN, tw), lambda b, n: (b, 0, n)),
                # 4-row bottom halo (own, small view of the same array)
                pl.BlockSpec((1, C_IN, halo),
                             lambda b, n: (b, 0, (n + 1) * (tile_h // 4))),
            ],
            out_specs=pl.BlockSpec((1, C_IN, tw), lambda b, n: (b, 0, n)),
            scratch_shapes=[
                pltpu.VMEM((C_IN, strip_lanes), jnp.float32),   # haloed row strip
                pltpu.VMEM((P_DIM, tw), jnp.float32),           # 75 shifted taps
                pltpu.VMEM((K_TAPS, tw), jnp.float32),          # spatially varying coefs
            ],
        ),
        compiler_params=pltpu.CompilerParams(
            dimension_semantics=("parallel", "parallel"),
            vmem_limit_bytes=vmem_limit),
        cost_estimate=pl.CostEstimate(
            flops=flops, transcendentals=0, bytes_accessed=bytes_accessed),
    )(w_mat, b_col, x_flat, x_flat)

    out = out_flat.reshape(B, C_IN, h_t, wp)[:, :, :H, 2:2 + W]
    return out


def reference_forward(x, conv_w, conv_b):
    """Pure-JAX reference mirroring the PyTorch module."""
    B, C, H, W = x.shape
    coef = jax.lax.conv_general_dilated(
        x, conv_w, window_strides=(1, 1), padding=((2, 2), (2, 2)),
        dimension_numbers=("NCHW", "OIHW", "NCHW"))
    coef = coef + conv_b.reshape(1, K_TAPS, 1, 1)
    x_pad = jnp.pad(x, ((0, 0), (0, 0), (2, 2), (2, 2)))
    Z = jnp.zeros_like(x)
    k = 0
    for hh in range(5):
        for ww in range(5):
            Z = Z + x_pad[:, :, hh:H + hh, ww:W + ww] * coef[:, k:k + 1]
            k += 1
    return Z + x


def _run_case(key, B, H, W, tol):
    kx, kw, kb = jax.random.split(key, 3)
    x = jax.random.normal(kx, (B, C_IN, H, W), dtype=jnp.float32)
    fan_in = C_IN * 5 * 5
    conv_w = jax.random.normal(kw, (K_TAPS, C_IN, 5, 5), dtype=jnp.float32) / np.sqrt(fan_in)
    conv_b = jax.random.normal(kb, (K_TAPS,), dtype=jnp.float32) * 0.01

    out = jax.block_until_ready(high_order_forward(x, conv_w, conv_b))
    ref = reference_forward(x, conv_w, conv_b)
    np.testing.assert_allclose(np.asarray(out), np.asarray(ref), rtol=tol, atol=tol)


if __name__ == "__main__":
    key = jax.random.PRNGKey(0)
    k1, k2, k3 = jax.random.split(key, 3)
    # Small spec-consistent shape: exercises the 4-row halo with real data and the
    # single-chunk filter loop (chunk == tw == 256).
    _run_case(k1, B=2, H=16, W=16, tol=2e-3)
    # Multi-row-tile path with H/W padding: exercises the halo view across tiles and
    # the multi-chunk (512-lane) filter loop.
    _run_case(k2, B=1, H=40, W=24, tol=2e-3)
    # Larger tile_h (tile growth path) with H not a multiple of the tile.
    _run_case(k3, B=1, H=72, W=56, tol=2e-3)
    print("KERNEL_OK")
</pallas_src>

<mosaic_0001>
module attributes {stable_mosaic.version = 11 : i64} {
  func.func @_horder_kernel(%arg0: i32, %arg1: i32, %arg2: memref<25x75xf32, #tpu.memory_space<vmem>>, %arg3: memref<25x1xf32, #tpu.memory_space<vmem>>, %arg4: memref<1x3x256xf32, #tpu.memory_space<vmem>>, %arg5: memref<1x3x128xf32, #tpu.memory_space<vmem>>, %arg6: memref<1x3x256xf32, #tpu.memory_space<vmem>>, %arg7: memref<3x640xf32, #tpu.memory_space<vmem>>, %arg8: memref<75x256xf32, #tpu.memory_space<vmem>>, %arg9: memref<25x256xf32, #tpu.memory_space<vmem>>) attributes {dimension_semantics = [#tpu.dimension_semantics<parallel>, #tpu.dimension_semantics<parallel>], iteration_bounds = array<i64: 2, 2>, scalar_prefetch = 0 : i64, scratch_operands = 3 : i64, tpu.core_type = #tpu.core_type<tc>, window_params = [{pipeline_mode = #tpu.pipeline_mode<synchronous>, transform_indices = @transform_0, window_bounds = array<i64: 25, 75>}, {pipeline_mode = #tpu.pipeline_mode<synchronous>, transform_indices = @transform_1, window_bounds = array<i64: 25, 1>}, {transform_indices = @transform_2, window_bounds = array<i64: 1, 3, 256>}, {transform_indices = @transform_3, window_bounds = array<i64: 1, 3, 128>}, {transform_indices = @transform_4, window_bounds = array<i64: 1, 3, 256>}]} {
    %cst = arith.constant 0.000000e+00 : f32
    %0 = vector.broadcast %cst : f32 to vector<3x128xf32>
    %c0 = arith.constant 0 : index
    %c0_0 = arith.constant 0 : index
    %1 = vector.load %arg7[%c0, %c0_0] : memref<3x640xf32, #tpu.memory_space<vmem>>, vector<3x128xf32>
    tpu.vector_store %arg7[%c0, %c0_0], %0 {strides = array<i32>} : memref<3x640xf32, #tpu.memory_space<vmem>>, vector<3x128xf32>,
    %c0_1 = arith.constant 0 : index
    %c0_2 = arith.constant 0 : index
    %c0_3 = arith.constant 0 : index
    %2 = vector.load %arg4[%c0_1, %c0_2, %c0_3] : memref<1x3x256xf32, #tpu.memory_space<vmem>>, vector<1x3x256xf32>
    %3 = vector.shape_cast %2 : vector<1x3x256xf32> to vector<3x256xf32>
    %c0_4 = arith.constant 0 : index
    %c128 = arith.constant 128 : index
    %4 = vector.load %arg7[%c0_4, %c128] : memref<3x640xf32, #tpu.memory_space<vmem>>, vector<3x256xf32>
    tpu.vector_store %arg7[%c0_4, %c128], %3 {strides = array<i32>} : memref<3x640xf32, #tpu.memory_space<vmem>>, vector<3x256xf32>,
    %c0_5 = arith.constant 0 : index
    %c0_6 = arith.constant 0 : index
    %c0_7 = arith.constant 0 : index
    %5 = vector.load %arg5[%c0_5, %c0_6, %c0_7] : memref<1x3x128xf32, #tpu.memory_space<vmem>>, vector<1x3x128xf32>
    %6 = vector.shape_cast %5 : vector<1x3x128xf32> to vector<3x128xf32>
    %c0_8 = arith.constant 0 : index
    %c384 = arith.constant 384 : index
    %7 = vector.load %arg7[%c0_8, %c384] : memref<3x640xf32, #tpu.memory_space<vmem>>, vector<3x128xf32>
    tpu.vector_store %arg7[%c0_8, %c384], %6 {strides = array<i32>} : memref<3x640xf32, #tpu.memory_space<vmem>>, vector<3x128xf32>,
    %cst_9 = arith.constant 0.000000e+00 : f32
    %8 = vector.broadcast %cst_9 : f32 to vector<3x128xf32>
    %c0_10 = arith.constant 0 : index
    %c512 = arith.constant 512 : index
    %9 = vector.load %arg7[%c0_10, %c512] : memref<3x640xf32, #tpu.memory_space<vmem>>, vector<3x128xf32>
    tpu.vector_store %arg7[%c0_10, %c512], %8 {strides = array<i32>} : memref<3x640xf32, #tpu.memory_space<vmem>>, vector<3x128xf32>,
    %c0_11 = arith.constant 0 : index
    %c126 = arith.constant 126 : index
    %10 = vector.load %arg7[%c0_11, %c126] : memref<3x640xf32, #tpu.memory_space<vmem>>, vector<3x256xf32>
    %c0_12 = arith.constant 0 : index
    %c0_13 = arith.constant 0 : index
    %11 = vector.load %arg8[%c0_12, %c0_13] : memref<75x256xf32, #tpu.memory_space<vmem>>, vector<3x256xf32>
    tpu.vector_store %arg8[%c0_12, %c0_13], %10 {strides = array<i32>} : memref<75x256xf32, #tpu.memory_space<vmem>>, vector<3x256xf32>,
    %c0_14 = arith.constant 0 : index
    %c127 = arith.constant 127 : index
    %12 = vector.load %arg7[%c0_14, %c127] : memref<3x640xf32, #tpu.memory_space<vmem>>, vector<3x256xf32>
    %c3 = arith.constant 3 : index
    %c0_15 = arith.constant 0 : index
    %13 = vector.load %arg8[%c3, %c0_15] : memref<75x256xf32, #tpu.memory_space<vmem>>, vector<3x256xf32>
    tpu.vector_store %arg8[%c3, %c0_15], %12 {strides = array<i32>} : memref<75x256xf32, #tpu.memory_space<vmem>>, vector<3x256xf32>,
    %c0_16 = arith.constant 0 : index
    %c128_17 = arith.constant 128 : index
    %14 = vector.load %arg7[%c0_16, %c128_17] : memref<3x640xf32, #tpu.memory_space<vmem>>, vector<3x256xf32>
    %c6 = arith.constant 6 : index
    %c0_18 = arith.constant 0 : index
    %15 = vector.load %arg8[%c6, %c0_18] : memref<75x256xf32, #tpu.memory_space<vmem>>, vector<3x256xf32>
    tpu.vector_store %arg8[%c6, %c0_18], %14 {strides = array<i32>} : memref<75x256xf32, #tpu.memory_space<vmem>>, vector<3x256xf32>,
    %c0_19 = arith.constant 0 : index
    %c129 = arith.constant 129 : index
    %16 = vector.load %arg7[%c0_19, %c129] : memref<3x640xf32, #tpu.memory_space<vmem>>, vector<3x256xf32>
    %c9 = arith.constant 9 : index
    %c0_20 = arith.constant 0 : index
    %17 = vector.load %arg8[%c9, %c0_20] : memref<75x256xf32, #tpu.memory_space<vmem>>, vector<3x256xf32>
    tpu.vector_store %arg8[%c9, %c0_20], %16 {strides = array<i32>} : memref<75x256xf32, #tpu.memory_space<vmem>>, vector<3x256xf32>,
    %c0_21 = arith.constant 0 : index
    %c130 = arith.constant 130 : index
    %18 = vector.load %arg7[%c0_21, %c130] : memref<3x640xf32, #tpu.memory_space<vmem>>, vector<3x256xf32>
    %c12 = arith.constant 12 : index
    %c0_22 = arith.constant 0 : index
    %19 = vector.load %arg8[%c12, %c0_22] : memref<75x256xf32, #tpu.memory_space<vmem>>, vector<3x256xf32>
    tpu.vector_store %arg8[%c12, %c0_22], %18 {strides = array<i32>} : memref<75x256xf32, #tpu.memory_space<vmem>>, vector<3x256xf32>,
    %c0_23 = arith.constant 0 : index
    %c158 = arith.constant 158 : index
    %20 = vector.load %arg7[%c0_23, %c158] : memref<3x640xf32, #tpu.memory_space<vmem>>, vector<3x256xf32>
    %c15 = arith.constant 15 : index
    %c0_24 = arith.constant 0 : index
    %21 = vector.load %arg8[%c15, %c0_24] : memref<75x256xf32, #tpu.memory_space<vmem>>, vector<3x256xf32>
    tpu.vector_store %arg8[%c15, %c0_24], %20 {strides = array<i32>} : memref<75x256xf32, #tpu.memory_space<vmem>>, vector<3x256xf32>,
    %c0_25 = arith.constant 0 : index
    %c159 = arith.constant 159 : index
    %22 = vector.load %arg7[%c0_25, %c159] : memref<3x640xf32, #tpu.memory_space<vmem>>, vector<3x256xf32>
    %c18 = arith.constant 18 : index
    %c0_26 = arith.constant 0 : index
    %23 = vector.load %arg8[%c18, %c0_26] : memref<75x256xf32, #tpu.memory_space<vmem>>, vector<3x256xf32>
    tpu.vector_store %arg8[%c18, %c0_26], %22 {strides = array<i32>} : memref<75x256xf32, #tpu.memory_space<vmem>>, vector<3x256xf32>,
    %c0_27 = arith.constant 0 : index
    %c160 = arith.constant 160 : index
    %24 = vector.load %arg7[%c0_27, %c160] : memref<3x640xf32, #tpu.memory_space<vmem>>, vector<3x256xf32>
    %c21 = arith.constant 21 : index
    %c0_28 = arith.constant 0 : index
    %25 = vector.load %arg8[%c21, %c0_28] : memref<75x256xf32, #tpu.memory_space<vmem>>, vector<3x256xf32>
    tpu.vector_store %arg8[%c21, %c0_28], %24 {strides = array<i32>} : memref<75x256xf32, #tpu.memory_space<vmem>>, vector<3x256xf32>,
    %c0_29 = arith.constant 0 : index
    %c161 = arith.constant 161 : index
    %26 = vector.load %arg7[%c0_29, %c161] : memref<3x640xf32, #tpu.memory_space<vmem>>, vector<3x256xf32>
    %c24 = arith.constant 24 : index
    %c0_30 = arith.constant 0 : index
    %27 = vector.load %arg8[%c24, %c0_30] : memref<75x256xf32, #tpu.memory_space<vmem>>, vector<3x256xf32>
    tpu.vector_store %arg8[%c24, %c0_30], %26 {strides = array<i32>} : memref<75x256xf32, #tpu.memory_space<vmem>>, vector<3x256xf32>,
    %c0_31 = arith.constant 0 : index
    %c162 = arith.constant 162 : index
    %28 = vector.load %arg7[%c0_31, %c162] : memref<3x640xf32, #tpu.memory_space<vmem>>, vector<3x256xf32>
    %c27 = arith.constant 27 : index
    %c0_32 = arith.constant 0 : index
    %29 = vector.load %arg8[%c27, %c0_32] : memref<75x256xf32, #tpu.memory_space<vmem>>, vector<3x256xf32>
    tpu.vector_store %arg8[%c27, %c0_32], %28 {strides = array<i32>} : memref<75x256xf32, #tpu.memory_space<vmem>>, vector<3x256xf32>,
    %c0_33 = arith.constant 0 : index
    %c190 = arith.constant 190 : index
    %30 = vector.load %arg7[%c0_33, %c190] : memref<3x640xf32, #tpu.memory_space<vmem>>, vector<3x256xf32>
    %c30 = arith.constant 30 : index
    %c0_34 = arith.constant 0 : index
    %31 = vector.load %arg8[%c30, %c0_34] : memref<75x256xf32, #tpu.memory_space<vmem>>, vector<3x256xf32>
    tpu.vector_store %arg8[%c30, %c0_34], %30 {strides = array<i32>} : memref<75x256xf32, #tpu.memory_space<vmem>>, vector<3x256xf32>,
    %c0_35 = arith.constant 0 : index
    %c191 = arith.constant 191 : index
    %32 = vector.load %arg7[%c0_35, %c191] : memref<3x640xf32, #tpu.memory_space<vmem>>, vector<3x256xf32>
    %c33 = arith.constant 33 : index
    %c0_36 = arith.constant 0 : index
    %33 = vector.load %arg8[%c33, %c0_36] : memref<75x256xf32, #tpu.memory_space<vmem>>, vector<3x256xf32>
    tpu.vector_store %arg8[%c33, %c0_36], %32 {strides = array<i32>} : memref<75x256xf32, #tpu.memory_space<vmem>>, vector<3x256xf32>,
    %c0_37 = arith.constant 0 : index
    %c192 = arith.constant 192 : index
    %34 = vector.load %arg7[%c0_37, %c192] : memref<3x640xf32, #tpu.memory_space<vmem>>, vector<3x256xf32>
    %c36 = arith.constant 36 : index
    %c0_38 = arith.constant 0 : index
    %35 = vector.load %arg8[%c36, %c0_38] : memref<75x256xf32, #tpu.memory_space<vmem>>, vector<3x256xf32>
    tpu.vector_store %arg8[%c36, %c0_38], %34 {strides = array<i32>} : memref<75x256xf32, #tpu.memory_space<vmem>>, vector<3x256xf32>,
    %c0_39 = arith.constant 0 : index
    %c193 = arith.constant 193 : index
    %36 = vector.load %arg7[%c0_39, %c193] : memref<3x640xf32, #tpu.memory_space<vmem>>, vector<3x256xf32>
    %c39 = arith.constant 39 : index
    %c0_40 = arith.constant 0 : index
    %37 = vector.load %arg8[%c39, %c0_40] : memref<75x256xf32, #tpu.memory_space<vmem>>, vector<3x256xf32>
    tpu.vector_store %arg8[%c39, %c0_40], %36 {strides = array<i32>} : memref<75x256xf32, #tpu.memory_space<vmem>>, vector<3x256xf32>,
    %c0_41 = arith.constant 0 : index
    %c194 = arith.constant 194 : index
    %38 = vector.load %arg7[%c0_41, %c194] : memref<3x640xf32, #tpu.memory_space<vmem>>, vector<3x256xf32>
    %c42 = arith.constant 42 : index
    %c0_42 = arith.constant 0 : index
    %39 = vector.load %arg8[%c42, %c0_42] : memref<75x256xf32, #tpu.memory_space<vmem>>, vector<3x256xf32>
    tpu.vector_store %arg8[%c42, %c0_42], %38 {strides = array<i32>} : memref<75x256xf32, #tpu.memory_space<vmem>>, vector<3x256xf32>,
    %c0_43 = arith.constant 0 : index
    %c222 = arith.constant 222 : index
    %40 = vector.load %arg7[%c0_43, %c222] : memref<3x640xf32, #tpu.memory_space<vmem>>, vector<3x256xf32>
    %c45 = arith.constant 45 : index
    %c0_44 = arith.constant 0 : index
    %41 = vector.load %arg8[%c45, %c0_44] : memref<75x256xf32, #tpu.memory_space<vmem>>, vector<3x256xf32>
    tpu.vector_store %arg8[%c45, %c0_44], %40 {strides = array<i32>} : memref<75x256xf32, #tpu.memory_space<vmem>>, vector<3x256xf32>,
    %c0_45 = arith.constant 0 : index
    %c223 = arith.constant 223 : index
    %42 = vector.load %arg7[%c0_45, %c223] : memref<3x640xf32, #tpu.memory_space<vmem>>, vector<3x256xf32>
    %c48 = arith.constant 48 : index
    %c0_46 = arith.constant 0 : index
    %43 = vector.load %arg8[%c48, %c0_46] : memref<75x256xf32, #tpu.memory_space<vmem>>, vector<3x256xf32>
    tpu.vector_store %arg8[%c48, %c0_46], %42 {strides = array<i32>} : memref<75x256xf32, #tpu.memory_space<vmem>>, vector<3x256xf32>,
    %c0_47 = arith.constant 0 : index
    %c224 = arith.constant 224 : index
    %44 = vector.load %arg7[%c0_47, %c224] : memref<3x640xf32, #tpu.memory_space<vmem>>, vector<3x256xf32>
    %c51 = arith.constant 51 : index
    %c0_48 = arith.constant 0 : index
    %45 = vector.load %arg8[%c51, %c0_48] : memref<75x256xf32, #tpu.memory_space<vmem>>, vector<3x256xf32>
    tpu.vector_store %arg8[%c51, %c0_48], %44 {strides = array<i32>} : memref<75x256xf32, #tpu.memory_space<vmem>>, vector<3x256xf32>,
    %c0_49 = arith.constant 0 : index
    %c225 = arith.constant 225 : index
    %46 = vector.load %arg7[%c0_49, %c225] : memref<3x640xf32, #tpu.memory_space<vmem>>, vector<3x256xf32>
    %c54 = arith.constant 54 : index
    %c0_50 = arith.constant 0 : index
    %47 = vector.load %arg8[%c54, %c0_50] : memref<75x256xf32, #tpu.memory_space<vmem>>, vector<3x256xf32>
    tpu.vector_store %arg8[%c54, %c0_50], %46 {strides = array<i32>} : memref<75x256xf32, #tpu.memory_space<vmem>>, vector<3x256xf32>,
    %c0_51 = arith.constant 0 : index
    %c226 = arith.constant 226 : index
    %48 = vector.load %arg7[%c0_51, %c226] : memref<3x640xf32, #tpu.memory_space<vmem>>, vector<3x256xf32>
    %c57 = arith.constant 57 : index
    %c0_52 = arith.constant 0 : index
    %49 = vector.load %arg8[%c57, %c0_52] : memref<75x256xf32, #tpu.memory_space<vmem>>, vector<3x256xf32>
    tpu.vector_store %arg8[%c57, %c0_52], %48 {strides = array<i32>} : memref<75x256xf32, #tpu.memory_space<vmem>>, vector<3x256xf32>,
    %c0_53 = arith.constant 0 : index
    %c254 = arith.constant 254 : index
    %50 = vector.load %arg7[%c0_53, %c254] : memref<3x640xf32, #tpu.memory_space<vmem>>, vector<3x256xf32>
    %c60 = arith.constant 60 : index
    %c0_54 = arith.constant 0 : index
    %51 = vector.load %arg8[%c60, %c0_54] : memref<75x256xf32, #tpu.memory_space<vmem>>, vector<3x256xf32>
    tpu.vector_store %arg8[%c60, %c0_54], %50 {strides = array<i32>} : memref<75x256xf32, #tpu.memory_space<vmem>>, vector<3x256xf32>,
    %c0_55 = arith.constant 0 : index
    %c255 = arith.constant 255 : index
    %52 = vector.load %arg7[%c0_55, %c255] : memref<3x640xf32, #tpu.memory_space<vmem>>, vector<3x256xf32>
    %c63 = arith.constant 63 : index
    %c0_56 = arith.constant 0 : index
    %53 = vector.load %arg8[%c63, %c0_56] : memref<75x256xf32, #tpu.memory_space<vmem>>, vector<3x256xf32>
    tpu.vector_store %arg8[%c63, %c0_56], %52 {strides = array<i32>} : memref<75x256xf32, #tpu.memory_space<vmem>>, vector<3x256xf32>,
    %c0_57 = arith.constant 0 : index
    %c256 = arith.constant 256 : index
    %54 = vector.load %arg7[%c0_57, %c256] : memref<3x640xf32, #tpu.memory_space<vmem>>, vector<3x256xf32>
    %c66 = arith.constant 66 : index
    %c0_58 = arith.constant 0 : index
    %55 = vector.load %arg8[%c66, %c0_58] : memref<75x256xf32, #tpu.memory_space<vmem>>, vector<3x256xf32>
    tpu.vector_store %arg8[%c66, %c0_58], %54 {strides = array<i32>} : memref<75x256xf32, #tpu.memory_space<vmem>>, vector<3x256xf32>,
    %c0_59 = arith.constant 0 : index
    %c257 = arith.constant 257 : index
    %56 = vector.load %arg7[%c0_59, %c257] : memref<3x640xf32, #tpu.memory_space<vmem>>, vector<3x256xf32>
    %c69 = arith.constant 69 : index
    %c0_60 = arith.constant 0 : index
    %57 = vector.load %arg8[%c69, %c0_60] : memref<75x256xf32, #tpu.memory_space<vmem>>, vector<3x256xf32>
    tpu.vector_store %arg8[%c69, %c0_60], %56 {strides = array<i32>} : memref<75x256xf32, #tpu.memory_space<vmem>>, vector<3x256xf32>,
    %c0_61 = arith.constant 0 : index
    %c258 = arith.constant 258 : index
    %58 = vector.load %arg7[%c0_61, %c258] : memref<3x640xf32, #tpu.memory_space<vmem>>, vector<3x256xf32>
    %c72 = arith.constant 72 : index
    %c0_62 = arith.constant 0 : index
    %59 = vector.load %arg8[%c72, %c0_62] : memref<75x256xf32, #tpu.memory_space<vmem>>, vector<3x256xf32>
    tpu.vector_store %arg8[%c72, %c0_62], %58 {strides = array<i32>} : memref<75x256xf32, #tpu.memory_space<vmem>>, vector<3x256xf32>,
    %c0_63 = arith.constant 0 : index
    %c0_64 = arith.constant 0 : index
    %60 = vector.load %arg2[%c0_63, %c0_64] : memref<25x75xf32, #tpu.memory_space<vmem>>, vector<25x75xf32>
    %c0_65 = arith.constant 0 : index
    %c0_66 = arith.constant 0 : index
    %61 = vector.load %arg8[%c0_65, %c0_66] : memref<75x256xf32, #tpu.memory_space<vmem>>, vector<75x256xf32>
    %cst_67 = arith.constant dense<0.000000e+00> : vector<25x256xf32>
    %62 = tpu.matmul %60, %61, %cst_67 {dimension_numbers = #tpu.dot_dimension_numbers<[1], [0], [0], [1], [0, 0, 1, 1], [], []>} : vector<25x75xf32>, vector<75x256xf32>, vector<25x256xf32> -> vector<25x256xf32>
    %c0_68 = arith.constant 0 : index
    %c0_69 = arith.constant 0 : index
    %63 = vector.load %arg3[%c0_68, %c0_69] : memref<25x1xf32, #tpu.memory_space<vmem>>, vector<25x1xf32>
    %64 = vector.broadcast %63 : vector<25x1xf32> to vector<25x256xf32>
    %65 = arith.addf %62, %64 : vector<25x256xf32>
    %c0_70 = arith.constant 0 : index
    %c0_71 = arith.constant 0 : index
    %66 = vector.load %arg9[%c0_70, %c0_71] : memref<25x256xf32, #tpu.memory_space<vmem>>, vector<25x256xf32>
    tpu.vector_store %arg9[%c0_70, %c0_71], %65 {strides = array<i32>} : memref<25x256xf32, #tpu.memory_space<vmem>>, vector<25x256xf32>,
    %c0_i32 = arith.constant 0 : i32
    %c256_i32 = arith.constant 256 : i32
    %67 = arith.muli %c0_i32, %c256_i32 : i32
    %68 = tpu.assume_multiple %67, 256 : i32
    %c36_72 = arith.constant 36 : index
    %69 = arith.index_cast %68 : i32 to index
    %70 = vector.load %arg8[%c36_72, %69] : memref<75x256xf32, #tpu.memory_space<vmem>>, vector<3x256xf32>
    %c0_73 = arith.constant 0 : index
    %71 = arith.index_cast %68 : i32 to index
    %72 = vector.load %arg8[%c0_73, %71] : memref<75x256xf32, #tpu.memory_space<vmem>>, vector<3x256xf32>
    %c0_74 = arith.constant 0 : index
    %73 = arith.index_cast %68 : i32 to index
    %74 = vector.load %arg9[%c0_74, %73] : memref<25x256xf32, #tpu.memory_space<vmem>>, vector<1x256xf32>
    %75 = vector.broadcast %74 : vector<1x256xf32> to vector<3x256xf32>
    %76 = arith.mulf %72, %75 : vector<3x256xf32>
    %77 = arith.addf %70, %76 : vector<3x256xf32>
    %c3_75 = arith.constant 3 : index
    %78 = arith.index_cast %68 : i32 to index
    %79 = vector.load %arg8[%c3_75, %78] : memref<75x256xf32, #tpu.memory_space<vmem>>, vector<3x256xf32>
    %c1 = arith.constant 1 : index
    %80 = arith.index_cast %68 : i32 to index
    %81 = vector.load %arg9[%c1, %80] : memref<25x256xf32, #tpu.memory_space<vmem>>, vector<1x256xf32>
    %82 = vector.broadcast %81 : vector<1x256xf32> to vector<3x256xf32>
    %83 = arith.mulf %79, %82 : vector<3x256xf32>
    %84 = arith.addf %77, %83 : vector<3x256xf32>
    %c6_76 = arith.constant 6 : index
    %85 = arith.index_cast %68 : i32 to index
    %86 = vector.load %arg8[%c6_76, %85] : memref<75x256xf32, #tpu.memory_space<vmem>>, vector<3x256xf32>
    %c2 = arith.constant 2 : index
    %87 = arith.index_cast %68 : i32 to index
    %88 = vector.load %arg9[%c2, %87] : memref<25x256xf32, #tpu.memory_space<vmem>>, vector<1x256xf32>
    %89 = vector.broadcast %88 : vector<1x256xf32> to vector<3x256xf32>
    %90 = arith.mulf %86, %89 : vector<3x256xf32>
    %91 = arith.addf %84, %90 : vector<3x256xf32>
    %c9_77 = arith.constant 9 : index
    %92 = arith.index_cast %68 : i32 to index
    %93 = vector.load %arg8[%c9_77, %92] : memref<75x256xf32, #tpu.memory_space<vmem>>, vector<3x256xf32>
    %c3_78 = arith.constant 3 : index
    %94 = arith.index_cast %68 : i32 to index
    %95 = vector.load %arg9[%c3_78, %94] : memref<25x256xf32, #tpu.memory_space<vmem>>, vector<1x256xf32>
    %96 = vector.broadcast %95 : vector<1x256xf32> to vector<3x256xf32>
    %97 = arith.mulf %93, %96 : vector<3x256xf32>
    %98 = arith.addf %91, %97 : vector<3x256xf32>
    %c12_79 = arith.constant 12 : index
    %99 = arith.index_cast %68 : i32 to index
    %100 = vector.load %arg8[%c12_79, %99] : memref<75x256xf32, #tpu.memory_space<vmem>>, vector<3x256xf32>
    %c4 = arith.constant 4 : index
    %101 = arith.index_cast %68 : i32 to index
    %102 = vector.load %arg9[%c4, %101] : memref<25x256xf32, #tpu.memory_space<vmem>>, vector<1x256xf32>
    %103 = vector.broadcast %102 : vector<1x256xf32> to vector<3x256xf32>
    %104 = arith.mulf %100, %103 : vector<3x256xf32>
    %105 = arith.addf %98, %104 : vector<3x256xf32>
    %c15_80 = arith.constant 15 : index
    %106 = arith.index_cast %68 : i32 to index
    %107 = vector.load %arg8[%c15_80, %106] : memref<75x256xf32, #tpu.memory_space<vmem>>, vector<3x256xf32>
    %c5 = arith.constant 5 : index
    %108 = arith.index_cast %68 : i32 to index
    %109 = vector.load %arg9[%c5, %108] : memref<25x256xf32, #tpu.memory_space<vmem>>, vector<1x256xf32>
    %110 = vector.broadcast %109 : vector<1x256xf32> to vector<3x256xf32>
    %111 = arith.mulf %107, %110 : vector<3x256xf32>
    %112 = arith.addf %105, %111 : vector<3x256xf32>
    %c18_81 = arith.constant 18 : index
    %113 = arith.index_cast %68 : i32 to index
    %114 = vector.load %arg8[%c18_81, %113] : memref<75x256xf32, #tpu.memory_space<vmem>>, vector<3x256xf32>
    %c6_82 = arith.constant 6 : index
    %115 = arith.index_cast %68 : i32 to index
    %116 = vector.load %arg9[%c6_82, %115] : memref<25x256xf32, #tpu.memory_space<vmem>>, vector<1x256xf32>
    %117 = vector.broadcast %116 : vector<1x256xf32> to vector<3x256xf32>
    %118 = arith.mulf %114, %117 : vector<3x256xf32>
    %119 = arith.addf %112, %118 : vector<3x256xf32>
    %c21_83 = arith.constant 21 : index
    %120 = arith.index_cast %68 : i32 to index
    %121 = vector.load %arg8[%c21_83, %120] : memref<75x256xf32, #tpu.memory_space<vmem>>, vector<3x256xf32>
    %c7 = arith.constant 7 : index
    %122 = arith.index_cast %68 : i32 to index
    %123 = vector.load %arg9[%c7, %122] : memref<25x256xf32, #tpu.memory_space<vmem>>, vector<1x256xf32>
    %124 = vector.broadcast %123 : vector<1x256xf32> to vector<3x256xf32>
    %125 = arith.mulf %121, %124 : vector<3x256xf32>
    %126 = arith.addf %119, %125 : vector<3x256xf32>
    %c24_84 = arith.constant 24 : index
    %127 = arith.index_cast %68 : i32 to index
    %128 = vector.load %arg8[%c24_84, %127] : memref<75x256xf32, #tpu.memory_space<vmem>>, vector<3x256xf32>
    %c8 = arith.constant 8 : index
    %129 = arith.index_cast %68 : i32 to index
    %130 = vector.load %arg9[%c8, %129] : memref<25x256xf32, #tpu.memory_space<vmem>>, vector<1x256xf32>
    %131 = vector.broadcast %130 : vector<1x256xf32> to vector<3x256xf32>
    %132 = arith.mulf %128, %131 : vector<3x256xf32>
    %133 = arith.addf %126, %132 : vector<3x256xf32>
    %c27_85 = arith.constant 27 : index
    %134 = arith.index_cast %68 : i32 to index
    %135 = vector.load %arg8[%c27_85, %134] : memref<75x256xf32, #tpu.memory_space<vmem>>, vector<3x256xf32>
    %c9_86 = arith.constant 9 : index
    %136 = arith.index_cast %68 : i32 to index
    %137 = vector.load %arg9[%c9_86, %136] : memref<25x256xf32, #tpu.memory_space<vmem>>, vector<1x256xf32>
    %138 = vector.broadcast %137 : vector<1x256xf32> to vector<3x256xf32>
    %139 = arith.mulf %135, %138 : vector<3x256xf32>
    %140 = arith.addf %133, %139 : vector<3x256xf32>
    %c30_87 = arith.constant 30 : index
    %141 = arith.index_cast %68 : i32 to index
    %142 = vector.load %arg8[%c30_87, %141] : memref<75x256xf32, #tpu.memory_space<vmem>>, vector<3x256xf32>
    %c10 = arith.constant 10 : index
    %143 = arith.index_cast %68 : i32 to index
    %144 = vector.load %arg9[%c10, %143] : memref<25x256xf32, #tpu.memory_space<vmem>>, vector<1x256xf32>
    %145 = vector.broadcast %144 : vector<1x256xf32> to vector<3x256xf32>
    %146 = arith.mulf %142, %145 : vector<3x256xf32>
    %147 = arith.addf %140, %146 : vector<3x256xf32>
    %c33_88 = arith.constant 33 : index
    %148 = arith.index_cast %68 : i32 to index
    %149 = vector.load %arg8[%c33_88, %148] : memref<75x256xf32, #tpu.memory_space<vmem>>, vector<3x256xf32>
    %c11 = arith.constant 11 : index
    %150 = arith.index_cast %68 : i32 to index
    %151 = vector.load %arg9[%c11, %150] : memref<25x256xf32, #tpu.memory_space<vmem>>, vector<1x256xf32>
    %152 = vector.broadcast %151 : vector<1x256xf32> to vector<3x256xf32>
    %153 = arith.mulf %149, %152 : vector<3x256xf32>
    %154 = arith.addf %147, %153 : vector<3x256xf32>
    %c36_89 = arith.constant 36 : index
    %155 = arith.index_cast %68 : i32 to index
    %156 = vector.load %arg8[%c36_89, %155] : memref<75x256xf32, #tpu.memory_space<vmem>>, vector<3x256xf32>
    %c12_90 = arith.constant 12 : index
    %157 = arith.index_cast %68 : i32 to index
    %158 = vector.load %arg9[%c12_90, %157] : memref<25x256xf32, #tpu.memory_space<vmem>>, vector<1x256xf32>
    %159 = vector.broadcast %158 : vector<1x256xf32> to vector<3x256xf32>
    %160 = arith.mulf %156, %159 : vector<3x256xf32>
    %161 = arith.addf %154, %160 : vector<3x256xf32>
    %c39_91 = arith.constant 39 : index
    %162 = arith.index_cast %68 : i32 to index
    %163 = vector.load %arg8[%c39_91, %162] : memref<75x256xf32, #tpu.memory_space<vmem>>, vector<3x256xf32>
    %c13 = arith.constant 13 : index
    %164 = arith.index_cast %68 : i32 to index
    %165 = vector.load %arg9[%c13, %164] : memref<25x256xf32, #tpu.memory_space<vmem>>, vector<1x256xf32>
    %166 = vector.broadcast %165 : vector<1x256xf32> to vector<3x256xf32>
    %167 = arith.mulf %163, %166 : vector<3x256xf32>
    %168 = arith.addf %161, %167 : vector<3x256xf32>
    %c42_92 = arith.constant 42 : index
    %169 = arith.index_cast %68 : i32 to index
    %170 = vector.load %arg8[%c42_92, %169] : memref<75x256xf32, #tpu.memory_space<vmem>>, vector<3x256xf32>
    %c14 = arith.constant 14 : index
    %171 = arith.index_cast %68 : i32 to index
    %172 = vector.load %arg9[%c14, %171] : memref<25x256xf32, #tpu.memory_space<vmem>>, vector<1x256xf32>
    %173 = vector.broadcast %172 : vector<1x256xf32> to vector<3x256xf32>
    %174 = arith.mulf %170, %173 : vector<3x256xf32>
    %175 = arith.addf %168, %174 : vector<3x256xf32>
    %c45_93 = arith.constant 45 : index
    %176 = arith.index_cast %68 : i32 to index
    %177 = vector.load %arg8[%c45_93, %176] : memref<75x256xf32, #tpu.memory_space<vmem>>, vector<3x256xf32>
    %c15_94 = arith.constant 15 : index
    %178 = arith.index_cast %68 : i32 to index
    %179 = vector.load %arg9[%c15_94, %178] : memref<25x256xf32, #tpu.memory_space<vmem>>, vector<1x256xf32>
    %180 = vector.broadcast %179 : vector<1x256xf32> to vector<3x256xf32>
    %181 = arith.mulf %177, %180 : vector<3x256xf32>
    %182 = arith.addf %175, %181 : vector<3x256xf32>
    %c48_95 = arith.constant 48 : index
    %183 = arith.index_cast %68 : i32 to index
    %184 = vector.load %arg8[%c48_95, %183] : memref<75x256xf32, #tpu.memory_space<vmem>>, vector<3x256xf32>
    %c16 = arith.constant 16 : index
    %185 = arith.index_cast %68 : i32 to index
    %186 = vector.load %arg9[%c16, %185] : memref<25x256xf32, #tpu.memory_space<vmem>>, vector<1x256xf32>
    %187 = vector.broadcast %186 : vector<1x256xf32> to vector<3x256xf32>
    %188 = arith.mulf %184, %187 : vector<3x256xf32>
    %189 = arith.addf %182, %188 : vector<3x256xf32>
    %c51_96 = arith.constant 51 : index
    %190 = arith.index_cast %68 : i32 to index
    %191 = vector.load %arg8[%c51_96, %190] : memref<75x256xf32, #tpu.memory_space<vmem>>, vector<3x256xf32>
    %c17 = arith.constant 17 : index
    %192 = arith.index_cast %68 : i32 to index
    %193 = vector.load %arg9[%c17, %192] : memref<25x256xf32, #tpu.memory_space<vmem>>, vector<1x256xf32>
    %194 = vector.broadcast %193 : vector<1x256xf32> to vector<3x256xf32>
    %195 = arith.mulf %191, %194 : vector<3x256xf32>
    %196 = arith.addf %189, %195 : vector<3x256xf32>
    %c54_97 = arith.constant 54 : index
    %197 = arith.index_cast %68 : i32 to index
    %198 = vector.load %arg8[%c54_97, %197] : memref<75x256xf32, #tpu.memory_space<vmem>>, vector<3x256xf32>
    %c18_98 = arith.constant 18 : index
    %199 = arith.index_cast %68 : i32 to index
    %200 = vector.load %arg9[%c18_98, %199] : memref<25x256xf32, #tpu.memory_space<vmem>>, vector<1x256xf32>
    %201 = vector.broadcast %200 : vector<1x256xf32> to vector<3x256xf32>
    %202 = arith.mulf %198, %201 : vector<3x256xf32>
    %203 = arith.addf %196, %202 : vector<3x256xf32>
    %c57_99 = arith.constant 57 : index
    %204 = arith.index_cast %68 : i32 to index
    %205 = vector.load %arg8[%c57_99, %204] : memref<75x256xf32, #tpu.memory_space<vmem>>, vector<3x256xf32>
    %c19 = arith.constant 19 : index
    %206 = arith.index_cast %68 : i32 to index
    %207 = vector.load %arg9[%c19, %206] : memref<25x256xf32, #tpu.memory_space<vmem>>, vector<1x256xf32>
    %208 = vector.broadcast %207 : vector<1x256xf32> to vector<3x256xf32>
    %209 = arith.mulf %205, %208 : vector<3x256xf32>
    %210 = arith.addf %203, %209 : vector<3x256xf32>
    %c60_100 = arith.constant 60 : index
    %211 = arith.index_cast %68 : i32 to index
    %212 = vector.load %arg8[%c60_100, %211] : memref<75x256xf32, #tpu.memory_space<vmem>>, vector<3x256xf32>
    %c20 = arith.constant 20 : index
    %213 = arith.index_cast %68 : i32 to index
    %214 = vector.load %arg9[%c20, %213] : memref<25x256xf32, #tpu.memory_space<vmem>>, vector<1x256xf32>
    %215 = vector.broadcast %214 : vector<1x256xf32> to vector<3x256xf32>
    %216 = arith.mulf %212, %215 : vector<3x256xf32>
    %217 = arith.addf %210, %216 : vector<3x256xf32>
    %c63_101 = arith.constant 63 : index
    %218 = arith.index_cast %68 : i32 to index
    %219 = vector.load %arg8[%c63_101, %218] : memref<75x256xf32, #tpu.memory_space<vmem>>, vector<3x256xf32>
    %c21_102 = arith.constant 21 : index
    %220 = arith.index_cast %68 : i32 to index
    %221 = vector.load %arg9[%c21_102, %220] : memref<25x256xf32, #tpu.memory_space<vmem>>, vector<1x256xf32>
    %222 = vector.broadcast %221 : vector<1x256xf32> to vector<3x256xf32>
    %223 = arith.mulf %219, %222 : vector<3x256xf32>
    %224 = arith.addf %217, %223 : vector<3x256xf32>
    %c66_103 = arith.constant 66 : index
    %225 = arith.index_cast %68 : i32 to index
    %226 = vector.load %arg8[%c66_103, %225] : memref<75x256xf32, #tpu.memory_space<vmem>>, vector<3x256xf32>
    %c22 = arith.constant 22 : index
    %227 = arith.index_cast %68 : i32 to index
    %228 = vector.load %arg9[%c22, %227] : memref<25x256xf32, #tpu.memory_space<vmem>>, vector<1x256xf32>
    %229 = vector.broadcast %228 : vector<1x256xf32> to vector<3x256xf32>
    %230 = arith.mulf %226, %229 : vector<3x256xf32>
    %231 = arith.addf %224, %230 : vector<3x256xf32>
    %c69_104 = arith.constant 69 : index
    %232 = arith.index_cast %68 : i32 to index
    %233 = vector.load %arg8[%c69_104, %232] : memref<75x256xf32, #tpu.memory_space<vmem>>, vector<3x256xf32>
    %c23 = arith.constant 23 : index
    %234 = arith.index_cast %68 : i32 to index
    %235 = vector.load %arg9[%c23, %234] : memref<25x256xf32, #tpu.memory_space<vmem>>, vector<1x256xf32>
    %236 = vector.broadcast %235 : vector<1x256xf32> to vector<3x256xf32>
    %237 = arith.mulf %233, %236 : vector<3x256xf32>
    %238 = arith.addf %231, %237 : vector<3x256xf32>
    %c72_105 = arith.constant 72 : index
    %239 = arith.index_cast %68 : i32 to index
    %240 = vector.load %arg8[%c72_105, %239] : memref<75x256xf32, #tpu.memory_space<vmem>>, vector<3x256xf32>
    %c24_106 = arith.constant 24 : index
    %241 = arith.index_cast %68 : i32 to index
    %242 = vector.load %arg9[%c24_106, %241] : memref<25x256xf32, #tpu.memory_space<vmem>>, vector<1x256xf32>
    %243 = vector.broadcast %242 : vector<1x256xf32> to vector<3x256xf32>
    %244 = arith.mulf %240, %243 : vector<3x256xf32>
    %245 = arith.addf %238, %244 : vector<3x256xf32>
    %c0_107 = arith.constant 0 : index
    %c0_108 = arith.constant 0 : index
    %246 = arith.index_cast %68 : i32 to index
    %247 = vector.load %arg6[%c0_107, %c0_108, %246] : memref<1x3x256xf32, #tpu.memory_space<vmem>>, vector<1x3x256xf32>
    %248 = vector.shape_cast %247 : vector<1x3x256xf32> to vector<3x256xf32>
    %249 = vector.shape_cast %245 : vector<3x256xf32> to vector<1x3x256xf32>
    tpu.vector_store %arg6[%c0_107, %c0_108, %246], %249 {strides = array<i32>} : memref<1x3x256xf32, #tpu.memory_space<vmem>>, vector<1x3x256xf32>,
    %c1_i32 = arith.constant 1 : i32
    return
  }
  func.func @transform_0(%arg0: i32, %arg1: i32) -> (i32, i32) {
    %c0_i32 = arith.constant 0 : i32
    %c0_i32_0 = arith.constant 0 : i32
    %c0_i32_1 = arith.constant 0 : i32
    return %c0_i32, %c0_i32_0 : i32, i32
  }
  func.func @transform_1(%arg0: i32, %arg1: i32) -> (i32, i32) {
    %c0_i32 = arith.constant 0 : i32
    %c0_i32_0 = arith.constant 0 : i32
    %c0_i32_1 = arith.constant 0 : i32
    return %c0_i32, %c0_i32_0 : i32, i32
  }
  func.func @transform_2(%arg0: i32, %arg1: i32) -> (i32, i32, i32) {
    %c0_i32 = arith.constant 0 : i32
    %c0_i32_0 = arith.constant 0 : i32
    return %arg0, %c0_i32, %arg1 : i32, i32, i32
  }
  func.func @transform_3(%arg0: i32, %arg1: i32) -> (i32, i32, i32) {
    %c1_i32 = arith.constant 1 : i32
    %0 = arith.addi %arg1, %c1_i32 : i32
    %c2_i32 = arith.constant 2 : i32
    %1 = arith.muli %0, %c2_i32 : i32
    %c0_i32 = arith.constant 0 : i32
    %c0_i32_0 = arith.constant 0 : i32
    return %arg0, %c0_i32, %1 : i32, i32, i32
  }
  func.func @transform_4(%arg0: i32, %arg1: i32) -> (i32, i32, i32) {
    %c0_i32 = arith.constant 0 : i32
    %c0_i32_0 = arith.constant 0 : i32
    return %arg0, %c0_i32, %arg1 : i32, i32, i32
  }
}

</mosaic_0001>

<bundles_post_ra>
// kernel: tpu_custom_call.1
= control target key start
LH: loop header
LB: loop body
LE: loop exit
PB: predicated region body
PF: predicated region fallthrough
CT: control target
= control target key end

     0   :  { %s1985_s15 = smov 0   ;;  %s1987_s16 = smov 0   ;;  %s2257_s0 = inlined_call_operand.vmem [shape: f32[25,75], index: 0, kind: input, shape index: {}]   ;;  %s2258_s1 = inlined_call_operand.vmem [shape: f32[25,1], index: 1, kind: input, shape index: {}]   ;;  %s2259_s2 = inlined_call_operand.vmem [shape: f32[2,3,640], index: 2, kind: input, shape index: {}]   ;;  %s2260_s3 = inlined_call_operand.vmem [shape: f32[2,3,640], index: 3, kind: input, shape index: {}]   ;;  %s2261_s4 = inlined_call_operand.vmem [shape: f32[2,3,512], index: 4, kind: output, shape index: {}]  }
   0x1   :  { %s1989_s17 = smov 0   ;;  %s1991_s18 = smov 0  }
   0x2   :  { %s1993_s19 = smov 0  }
   0x3 LB: > { %s23_s20 = sadd.s32 1, %s1928_s17  ;;  %s26_s21 = sadd.s32 1, %s1932_s18  ;;  %s1936_s19 = sphi %s1993_s19, %s14_s19   ;;  %s1932_s18 = sphi %s1991_s18, %s2265_s18   ;;  %s1928_s17 = sphi %s1989_s17, %s2264_s17   ;;  %s1924_s16 = sphi %s1987_s16, %s2263_s16   ;;  %s1920_s15 = sphi %s1985_s15, %s2262_s15  }
   0x4   : > { %p24_p0 = scmp.ge.s32.totalorder %s23_s20, 2  ;;  %p1751_p1 = scmp.ge.s32.totalorder %s1936_s19, 1 }
   0x5   : > { %p214_p2 = scmp.lt.s32.totalorder %s1936_s19, 5 }
   0x6   : > { %s2267_s20 = smov (%p24_p0, %s23_s20), 0  ;;  %s2269_s21 = smov (!%p24_p0, %s26_s21), %s1932_s18 }
   0x7   : > { %p215_p3 = pnand %p1751_p1, %p214_p2  ;;  %p28_p4 = scmp.ge.s32.totalorder %s2269_s21, 2 }
   0x8   : > { %s1752_s22 = sshll.u32 (!%p215_p3), %s1920_s15, 1  ;;  %p267_p5 = scmp.lt.s32.totalorder (!%p215_p3), %s1924_s16, 1  ;;  %v1938_v0 = vmov (!%p215_p3), 0.0   ;;  %vm319_vm0 = vcmask (!%p215_p3), 15360   ;;  %vm391_vm1 = vcmask (!%p215_p3), 1031168   ;;  %vm372_vm2 = vcmask (!%p215_p3), 1039360  }
   0x9   : > { %s2271_s21 = smov (%p28_p4, %s2269_s21), 0  ;;  %218 = sbr.rel (%p215_p3) target bundleno = 586 (0x24a), region = 36 }
   0xa   : > { %p269_p6 = scmp.lt.s32.totalorder (!%p215_p3), %s1752_s22, 4  ;;  %p295_p7 = scmp.lt.s32.totalorder (!%p215_p3), %s1752_s22, 3  ;;  %302 = vst [vmem:[#allocation2] sm:$0x7] (!%p215_p3), %v1938_v0  ;;  %307 = vst [vmem:[#allocation2 + $0x10] sm:$0x7] (!%p215_p3), %v1938_v0  ;;  %931 = vmatprep.mubr.f32.mxu0 (!%p215_p3), %v1938_v0  ;;  %943 = vmatprep.mubr.f32.mxu1 (!%p215_p3), %v1938_v0 }
   0xb   : > { %s1772_s7 = sadd.s32 (!%p215_p3), 2, %s1752_s22  ;;  %s1939_s13 = smov (!%p215_p3), 2   ;;  %vm412_vm3 = vcmask (!%p215_p3), 801792   ;;  %vm340_vm4 = vcmask (!%p215_p3), 7168   ;;  %vm435_vm5 = vcmask (!%p215_p3), 793600   ;;  %vm456_vm6 = vcmask (!%p215_p3), 785408  }
   0xc   : > { %p284_p8 = scmp.lt.s32.totalorder (!%p215_p3), %s1772_s7, 4  ;;  %s1940_s14 = smov (!%p215_p3), 1   ;;  %vm474_vm7 = vcmask (!%p215_p3), 777216   ;;  %vm495_vm8 = vcmask (!%p215_p3), 769024   ;;  %vm516_vm9 = vcmask (!%p215_p3), 539648   ;;  %vm539_vm10 = vcmask (!%p215_p3), 531456  }
   0xd   : > { %s1941_s15 = smov (!%p215_p3), 126   ;;  %s1950_s30 = smov (!%p215_p3), 64   ;;  %vm558_vm11 = vcmask (!%p215_p3), 523264   ;;  %vm579_vm12 = vcmask (!%p215_p3), 515072   ;;  %vm602_vm13 = vcmask (!%p215_p3), 506880   ;;  %vm623_vm14 = vcmask (!%p215_p3), 277504  }
   0xe   : > { %s1951_s5 = smov (!%p215_p3), 63   ;;  %s1956_s10 = smov (!%p215_p3), 31   ;;  %vm641_vm15 = vcmask (!%p215_p3), 269312  }
   0xf   : > { %s1957_s11 = smov (!%p215_p3), 30  }
  0x10   : > { %s2273_s16 = smov (!%p267_p5, %s1924_s16), 1  ;;  %s2275_s7 = smov (!%p284_p8, %s1772_s7), 4 }
  0x11   : > { %s270_s23 = scalar_select %p269_p6, %s1752_s22, 4 }
  0x12   : > { %s1805_s24 = smul.u32 5, %s2273_s16  ;;  %s1757_s25 = sshll.u32 %s2273_s16, 2 }
  0x13   : > { %s296_s26 = scalar_select %p295_p7, %s1752_s22, 3 }
  0x14   : > { %s272_s27 = sadd.s32 %s1805_s24, %s270_s23  ;;  %s287_s8 = sadd.s32 %s1805_s24, %s2275_s7 }
  0x15   : > { %s1753_s28 = sshll.u32 %s272_s27, 2  ;;  %s2019_s29 = sadd.s32 %s1757_s25, %s296_s26 }
  0x16   : > { %s274_s6 = scalar_lea.vmem %s2259_s2, %s1753_s28  ;;  %s1755_s9 = sshll.u32 %s287_s8, 2 }
  0x17   : > { %v303_v1 = vld [vmem:[%s274_s6] sm:$0x77]  ;;  %s289_s12 = scalar_lea.vmem %s2260_s3, %s1755_s9  ;;  %s1942_s16 = smov 127  }
  0x18   : > { %304 = vst [vmem:[#allocation2 + $0x4] sm:$0x77] %v303_v1  ;;  %v305_v5 = vld [vmem:[%s289_s12] sm:$0x7]  ;;  %s1943_s22 = smov 98   ;;  %s1944_s23 = smov 97  }
  0x19   : > { %306 = vst [vmem:[#allocation2 + $0xc] sm:$0x7] %v305_v5  ;;  %s1945_s24 = smov 96   ;;  %s1946_s25 = smov 95  }
  0x1a   : > { %s1947_s26 = smov 94   ;;  %s1948_s27 = smov 66  }
  0x1b   : > { %s1949_s28 = smov 65   ;;  %s1952_s6 = smov 62  }
  0x1c   : > { %s1953_s7 = smov 34   ;;  %s1954_s8 = smov 33  }
  0x1d   : > { %s1955_s9 = smov 32  }
  0x1f   : > { %v309_v2 = vld [vmem:[#allocation2 + $0x8] sm:$0x7]  ;;  %v308_v7 = vld [vmem:[#allocation2] sm:$0x77] }
  0x20   : > { %v327_v3 = vld [vmem:[#allocation2 + $0x8] sm:$0x7]  ;;  %317 = vrot.lane.b32.xlu0 %v309_v2, %s1939_s13  ;;  %v359_v9 = vld [vmem:[#allocation2 + $0xc] sm:$0x7]  ;;  %v312_v10 = vcombine.high %v308_v7, %v308_v7  ;;  %v326_v19 = vld [vmem:[#allocation2] sm:$0x77] }
  0x21   : > { %v333_v4 = vrot.slane %v327_v3, 5  ;;  %v379_v6 = vld [vmem:[#allocation2 + $0x4] sm:$0x77]  ;;  %v365_v12 = vrot.slane %v359_v9, 7  ;;  %v399_v15 = vld [vmem:[#allocation2 + $0xc] sm:$0x7]  ;;  %v330_v22 = vcombine.high %v326_v19, %v326_v19 }
  0x22   : > { %v358_v8 = vld [vmem:[#allocation2 + $0x4] sm:$0x77]  ;;  %v1872_v14 = vld [vmem:[#allocation2 + $0xc] ss:$0 sps:$4 sm:$0x77]   ;;  %v405_v18 = vrot.slane %v399_v15, 1  ;;  %v383_v29 = vcombine.low %v379_v6, %v379_v6 }
  0x23   : > { %338 = vrot.lane.b32.xlu1 %v333_v4, %s1940_s14  ;;  %v362_v11 = vcombine.high %v358_v8, %v358_v8  ;;  %v398_v13 = vld [vmem:[#allocation2 + $0x4] sm:$0x77]  ;;  %v331_v21 = vrot.slane %v326_v19, 5  ;;  %v363_v23 = vrot.slane %v358_v8, 7  ;;  %v332_v24 = vrot.slane %v330_v22, 5 }
  0x24   : > { %387 = vrot.lane.b32.xlu0 %v379_v6, %s1941_s15  ;;  %v402_v17 = vcombine.high %v398_v13, %v398_v13  ;;  %v403_v25 = vrot.slane %v398_v13, 1  ;;  %v421_v26 = vld [vmem:[#allocation2 + $0x4] sm:$0x77]  ;;  %v422_v27 = vld [vmem:[#allocation2 + $0xc] sm:$0x7] }
  0x25   : > { %v364_v16 = vrot.slane %v362_v11, 7  ;;  %v347_v28 = vld [vmem:[#allocation2 + $0x4] sm:$0x77]  ;;  %v425_v30 = vcombine.high %v421_v26, %v421_v26  ;;  %v428_v32 = vrot.slane %v422_v27, 6  ;;  %v443_v35 = vld [vmem:[#allocation2 + $0xc] sm:$0x7] }
  0x26   : > { %v404_v20 = vrot.slane %v402_v17, 1  ;;  %v349_v31 = vcombine.high %v347_v28, %v347_v28  ;;  %v442_v33 = vld [vmem:[#allocation2 + $0x4] sm:$0x77]  ;;  %v350_v34 = vrot.slane %v347_v28, 2  ;;  %v449_v39 = vrot.slane %v443_v35, 3 }
  0x27   : > { %370 = vrot.lane.b32.xlu1 %v365_v12, %s1942_s16  ;;  %v427_v37 = vrot.slane %v425_v30, 6  ;;  %v446_v38 = vcombine.high %v442_v33, %v442_v33  ;;  %v463_v41 = vld [vmem:[#allocation2 + $0x4] sm:$0x77]  ;;  %v464_v43 = vld [vmem:[#allocation2 + $0xc] sm:$0x7]  ;;  %v447_v54 = vrot.slane %v442_v33, 3 }
  0x28   : > { %313 = vrot.lane.b32.xlu0 %v308_v7, %s1939_s13  ;;  %v351_v36 = vrot.slane %v349_v31, 2  ;;  %354 = vst [vmem:[#allocation3 + $0x10] ss:$-12 sps:$4 sm:$0xc1] %v350_v34   ;;  %v481_v42 = vld [vmem:[#allocation2 + $0x4] sm:$0x77]  ;;  %v467_v45 = vcombine.high %v463_v41, %v463_v41 }
  0x29   : > { %v448_v40 = vrot.slane %v446_v38, 3  ;;  %v482_v44 = vld [vmem:[#allocation2 + $0xc] sm:$0x7]  ;;  %v485_v46 = vcombine.high %v481_v42, %v481_v42  ;;  %v502_v48 = vld [vmem:[#allocation2 + $0x4] sm:$0x77]  ;;  %v426_v56 = vrot.slane %v421_v26, 6 }
  0x2a   : > { %355 = vst [vmem:[#allocation3 + $0x18] ss:$-12 sps:$4 sm:$0xc1] %v351_v36   ;;  %v488_v47 = vrot.slane %v482_v44, 5  ;;  %v503_v49 = vld [vmem:[#allocation2 + $0xc] sm:$0x7]  ;;  %v506_v51 = vcombine.high %v502_v48, %v502_v48 }
  0x2b   : > { %389 = vrot.lane.b32.xlu1 %v1872_v14, %s1941_s15  ;;  %v487_v50 = vrot.slane %v485_v46, 5  ;;  %v509_v52 = vrot.slane %v503_v49, 2  ;;  %v525_v55 = vld [vmem:[#allocation2 + $0x4] sm:$0x77]  ;;  %v486_v57 = vrot.slane %v481_v42, 5  ;;  %v507_v61 = vrot.slane %v502_v48, 2 }
  0x2c   : > { %315 = vrot.lane.b32.xlu0 %v312_v10, %s1939_s13  ;;  %v508_v53 = vrot.slane %v506_v51, 2  ;;  %v529_v58 = vcombine.high %v525_v55, %v525_v55  ;;  %v565_v60 = vld [vmem:[#allocation2 + $0x4] sm:$0x77]  ;;  %v526_v62 = vld [vmem:[#allocation2 + $0xc] sm:$0x7] }
  0x2d   : > { %v569_v63 = vcombine.high %v565_v60, %v565_v60  ;;  %v546_v1 = vld [vmem:[#allocation2 + $0x4] sm:$0x77]  ;;  %v532_v3 = vrot.slane %v526_v62, 7  ;;  %v1883_v7 = vld [vmem:[#allocation2 + $0xc] ss:$0 sps:$4 sm:$0x77]  }
  0x2e   : > { %v531_v59 = vrot.slane %v529_v58, 7  ;;  %v588_v2 = vld [vmem:[#allocation2 + $0x4] sm:$0x77]  ;;  %v566_v8 = vld [vmem:[#allocation2 + $0xc] sm:$0x7]  ;;  %v550_v19 = vcombine.low %v546_v1, %v546_v1 }
  0x2f   : > { %410 = vrot.lane.b32.xlu1 %v405_v18, %s1943_s22  ;;  %v571_v4 = vrot.slane %v569_v63, 1  ;;  %v592_v5 = vcombine.high %v588_v2, %v588_v2  ;;  %v609_v6 = vld [vmem:[#allocation2 + $0x4] sm:$0x77]  ;;  %v572_v11 = vrot.slane %v566_v8, 1  ;;  %v589_v12 = vld [vmem:[#allocation2 + $0xc] sm:$0x7] }
  0x30   : > { %368 = vrot.lane.b32.xlu0 %v364_v16, %s1942_s16  ;;  %v613_v10 = vcombine.high %v609_v6, %v609_v6  ;;  %v595_v14 = vrot.slane %v589_v12, 6  ;;  %v610_v15 = vld [vmem:[#allocation2 + $0xc] sm:$0x7]  ;;  %v530_v16 = vrot.slane %v525_v55, 7  ;;  %v570_v18 = vrot.slane %v565_v60, 1 }
  0x31   : > { %v594_v9 = vrot.slane %v592_v5, 6  ;;  %v616_v17 = vrot.slane %v610_v15, 3  ;;  %v630_v22 = vld [vmem:[#allocation2 + $0x4] sm:$0x77]  ;;  %v670_v30 = vld [vmem:[#allocation2 + $0xc] sm:$0x7] }
  0x32   : > { %v615_v13 = vrot.slane %v613_v10, 3  ;;  %v634_v26 = vcombine.high %v630_v22, %v630_v22  ;;  %v676_v33 = vrot.slane %v670_v30, 2  ;;  %v692_v34 = vld [vmem:[#allocation2 + $0x4] sm:$0x77]  ;;  %v693_v35 = vld [vmem:[#allocation2 + $0xc] sm:$0x7] }
  0x33   : > { %334 = vrot.lane.b32.xlu1 %v331_v21, %s1940_s14  ;;  %v593_v21 = vrot.slane %v588_v2, 6  ;;  %v699_v38 = vrot.slane %v693_v35, 7  ;;  %v732_v42 = vld [vmem:[#allocation2 + $0xc] sm:$0x7]  ;;  %v713_v44 = vld [vmem:[#allocation2 + $0x4] sm:$0x77] }
  0x34   : > { %408 = vrot.lane.b32.xlu0 %v404_v20, %s1943_s22  ;;  %v614_v20 = vrot.slane %v609_v6, 3  ;;  %v697_v49 = vrot.slane %v692_v34, 7  ;;  %v763_v58 = vld [vmem:[#allocation2 + $0x10] sm:$0x7]  ;;  %v717_v60 = vcombine.low %v713_v44, %v713_v44  ;;  %v782_v6 = vld [vmem:[#allocation2 + $0x8] sm:$0x77] }
  0x35   : > { %v769_v62 = vrot.slane %v763_v58, 3  ;;  %v783_v8 = vld [vmem:[#allocation2 + $0x10] sm:$0x7] }
  0x37   : > { %336 = vrot.lane.b32.xlu1 %v332_v24, %s1940_s14  ;;  %v631_v24 = vld [vmem:[#allocation2 + $0xc] sm:$0x7] }
  0x38   : > { %366 = vrot.lane.b32.xlu0 %v363_v23, %s1942_s16  ;;  %v648_v23 = vld [vmem:[#allocation2 + $0x4] sm:$0x77] }
  0x39   : > { %v652_v27 = vcombine.high %v648_v23, %v648_v23 }
  0x3b   : > { %385 = vrot.lane.b32.xlu1 %v383_v29, %s1941_s15  ;;  %v669_v29 = vld [vmem:[#allocation2 + $0x4] sm:$0x77]  ;;  %v654_v31 = vrot.slane %v652_v27, 5  ;;  %v1958_v27 = vmov 0  }
  0x3c   : > { %406 = vrot.lane.b32.xlu0 %v403_v25, %s1943_s22  ;;  %v649_v25 = vld [vmem:[#allocation2 + $0xc] sm:$0x7]  ;;  %1868 = vset.pattern.permute.xlu1 %v1958_v27 }
  0x3d   : > { %v655_v28 = vrot.slane %v649_v25, 5  ;;  %v823_v25 = vld [vmem:[%s2258_s1] sm:$0xff]  ;;  %1869 = vset.pattern.permute.xlu0 %v1958_v27 }
  0x3f   : > { %431 = vrot.lane.b32.xlu1 %v427_v37, %s1944_s23  ;;  %v696_v37 = vcombine.high %v692_v34, %v692_v34 }
  0x40   : > { %433 = vrot.lane.b32.xlu0 %v428_v32, %s1944_s23  ;;  %v673_v32 = vcombine.high %v669_v29, %v669_v29 }
  0x42   : > { %v675_v36 = vrot.slane %v673_v32, 2 }
  0x43   : > { %452 = vrot.lane.b32.xlu1 %v448_v40, %s1945_s24  ;;  %v1892_v40 = vld [vmem:[#allocation2 + $0xc] ss:$0 sps:$4 sm:$0x77]  }
  0x44   : > { %454 = vrot.lane.b32.xlu0 %v449_v39, %s1945_s24  ;;  %v698_v39 = vrot.slane %v696_v37, 7 }
  0x47   : > { %470 = vrot.lane.b32.xlu1 %v467_v45, %s1946_s25  ;;  %v738_v45 = vrot.slane %v732_v42, 1 }
  0x48   : > { %472 = vrot.lane.b32.xlu0 %v464_v43, %s1946_s25 }
  0x4b   : > { %491 = vrot.lane.b32.xlu1 %v487_v50, %s1947_s26  ;;  %v753_v50 = vld [vmem:[#allocation2 + $0x8] sm:$0x77] }
  0x4c   : > { %493 = vrot.lane.b32.xlu0 %v488_v47, %s1947_s26  ;;  %v653_v47 = vrot.slane %v648_v23, 5  ;;  %v756_v2 = vrot.slane %v753_v50, 6 }
  0x4e   : > { %760 = vst [vmem:[#allocation3 + $0x80] sm:$0x1c] %v756_v2 }
  0x4f   : > { %512 = vrot.lane.b32.xlu1 %v508_v53, %s1948_s27 }
  0x50   : > { %514 = vrot.lane.b32.xlu0 %v509_v52, %s1948_s27  ;;  %v755_v52 = vcombine.high %v753_v50, %v753_v50 }
  0x53   : > { %429 = vrot.lane.b32.xlu1 %v426_v56, %s1944_s23  ;;  %v762_v56 = vld [vmem:[#allocation2 + $0x8] sm:$0x77] }
  0x54   : > { %450 = vrot.lane.b32.xlu0 %v447_v54, %s1945_s24  ;;  %v674_v54 = vrot.slane %v669_v29, 2  ;;  %v767_v15 = vrot.slane %v762_v56, 3 }
  0x57   : > { %468 = vrot.lane.b32.xlu1 %v463_v41, %s1946_s25  ;;  %v731_v41 = vld [vmem:[#allocation2 + $0x4] sm:$0x77] }
  0x58   : > { %489 = vrot.lane.b32.xlu0 %v486_v57, %s1947_s26  ;;  %v735_v43 = vcombine.high %v731_v41, %v731_v41  ;;  %v736_v55 = vrot.slane %v731_v41, 1  ;;  %v757_v57 = vrot.slane %v755_v52, 6 }
  0x5a   : > { %v737_v46 = vrot.slane %v735_v43, 1  ;;  %761 = vst [vmem:[#allocation3 + $0x88] sm:$0x1c] %v757_v57 }
  0x5b   : > { %510 = vrot.lane.b32.xlu1 %v507_v61, %s1948_s27  ;;  %v766_v61 = vcombine.high %v762_v56, %v762_v56 }
  0x5c   : > { %535 = vrot.lane.b32.xlu0 %v531_v59, %s1949_s28 }
  0x5f   : > { %537 = vrot.lane.b32.xlu1 %v532_v3, %s1949_s28  ;;  %v768_v3 = vrot.slane %v766_v61, 3 }
  0x60   : > { %554 = vrot.lane.b32.xlu0 %v546_v1, %s1950_s30 }
  0x63   : > { %556 = vrot.lane.b32.xlu1 %v1883_v7, %s1950_s30 }
  0x64   : > { %575 = vrot.lane.b32.xlu0 %v571_v4, %s1951_s5 }
  0x67   : > { %577 = vrot.lane.b32.xlu1 %v572_v11, %s1951_s5  ;;  %v786_v11 = vcombine.high %v782_v6, %v782_v6 }
  0x68   : > { %598 = vrot.lane.b32.xlu0 %v594_v9, %s1952_s6 }
  0x6b   : > { %600 = vrot.lane.b32.xlu1 %v595_v14, %s1952_s6 }
  0x6c   : > { %619 = vrot.lane.b32.xlu0 %v615_v13, %s1953_s7 }
  0x6f   : > { %621 = vrot.lane.b32.xlu1 %v616_v17, %s1953_s7 }
  0x70   : > { %533 = vrot.lane.b32.xlu0 %v530_v16, %s1949_s28 }
  0x73   : > { %552 = vrot.lane.b32.xlu1 %v550_v19, %s1950_s30 }
  0x74   : > { %573 = vrot.lane.b32.xlu0 %v570_v18, %s1951_s5 }
  0x77   : > { %596 = vrot.lane.b32.xlu1 %v593_v21, %s1952_s6 }
  0x78   : > { %617 = vrot.lane.b32.xlu0 %v614_v20, %s1953_s7 }
  0x7b   : > { %637 = vrot.lane.b32.xlu1 %v634_v26, %s1954_s8 }
  0x7c   : > { %639 = vrot.lane.b32.xlu0 %v631_v24, %s1954_s8 }
  0x7f   : > { %658 = vrot.lane.b32.xlu1 %v654_v31, %s1955_s9  ;;  %v825_v31 = vld [vmem:[%s2258_s1 + $0x10] sm:$0xff] }
  0x80   : > { %660 = vrot.lane.b32.xlu0 %v655_v28, %s1955_s9  ;;  %v824_v28 = vld [vmem:[%s2258_s1 + $0x8] sm:$0xff] }
  0x83   : > { %679 = vrot.lane.b32.xlu1 %v675_v36, %s1956_s10 }
  0x84   : > { %681 = vrot.lane.b32.xlu0 %v676_v33, %s1956_s10 }
  0x87   : > { %702 = vrot.lane.b32.xlu1 %v698_v39, %s1957_s11 }
  0x88   : > { %704 = vrot.lane.b32.xlu0 %v699_v38, %s1957_s11  ;;  %v826_v38 = vld [vmem:[%s2258_s1 + $0x18] sm:$0x1] }
  0x8b   : > { %721 = vrot.lane.b32.xlu1 %v713_v44, %s1939_s13 }
  0x8c   : > { %723 = vrot.lane.b32.xlu0 %v1892_v40, %s1939_s13 }
  0x8f   : > { %741 = vrot.lane.b32.xlu1 %v737_v46, %s1940_s14 }
  0x90   : > { %743 = vrot.lane.b32.xlu0 %v738_v45, %s1940_s14 }
  0x92   : > { %v318_v48 = vpop.permute.xlu0 %317 }
  0x93   : > { %635 = vrot.lane.b32.xlu1 %v630_v22, %s1954_s8  ;;  %s1758_s8 = sshll.u32 %s2019_s29, 2 }
  0x94   : > { %656 = vrot.lane.b32.xlu0 %v653_v47, %s1955_s9 }
  0x95   : > { %v339_v53 = vpop.permute.xlu1 %338 }
  0x96   : > { %v2056_v51 = vpop.permute.xlu0 %387 }
  0x97   : > { %677 = vrot.lane.b32.xlu1 %v674_v54, %s1956_s10 }
  0x98   : > { %700 = vrot.lane.b32.xlu0 %v697_v49, %s1957_s11  ;;  %s300_s11 = scalar_lea.vmem %s2261_s4, %s1758_s8 }
  0x99   : > { %v371_v63 = vpop.permute.xlu1 %370 }
  0x9a   : > { %v314_v59 = vpop.permute.xlu0 %313 }
  0x9b   : > { %719 = vrot.lane.b32.xlu1 %v717_v60, %s1939_s13 }
  0x9c   : > { %739 = vrot.lane.b32.xlu0 %v736_v55, %s1940_s14 }
  0x9d   : > { %v390_v7 = vpop.permute.xlu1 %389 }
  0x9e   : > { %v316_v1 = vpop.permute.xlu0 %315  ;;  %v393_v9 = vsel %vm391_vm1, %v2056_v51, %v390_v7 }
  0x9f   : > { %v320_v4 = vsel %vm319_vm0, %v314_v59, %v316_v1  ;;  %v321_v5 = vsel %vm319_vm0, %v316_v1, %v318_v48  ;;  %397 = vst [vmem:[#allocation3 + $0x18] sm:$0x70] %v393_v9  ;;  %772 = vrot.lane.b32.xlu1 %v768_v3, %s1942_s16 }
  0xa0   : > { %324 = vst [vmem:[#allocation3] sm:$0x7] %v320_v4  ;;  %325 = vst [vmem:[#allocation3 + $0x8] sm:$0x7] %v321_v5  ;;  %774 = vrot.lane.b32.xlu0 %v769_v62, %s1942_s16 }
  0xa1   : > { %v411_v13 = vpop.permute.xlu1 %410 }
  0xa2   : > { %v369_v10 = vpop.permute.xlu0 %368 }
  0xa3   : > { %v374_v12 = vsel %vm372_vm2, %v369_v10, %v371_v63  ;;  %789 = vrot.lane.b32.xlu1 %v786_v11, %s1941_s15 }
  0xa4   : > { %378 = vst [vmem:[#allocation3 + $0x18] sm:$0xe] %v374_v12  ;;  %791 = vrot.lane.b32.xlu0 %v783_v8, %s1941_s15 }
  0xa5   : > { %v335_v17 = vpop.permute.xlu1 %334 }
  0xa6   : > { %v409_v14 = vpop.permute.xlu0 %408 }
  0xa7   : > { %v414_v16 = vsel %vm412_vm3, %v409_v14, %v411_v13  ;;  %770 = vrot.lane.b32.xlu1 %v767_v15, %s1942_s16 }
  0xa8   : > { %418 = vst [vmem:[#allocation3 + $0x28] ss:$-12 sps:$4 sm:$0x83] %v414_v16   ;;  %787 = vrot.lane.b32.xlu0 %v782_v6, %s1941_s15 }
  0xa9   : > { %v337_v20 = vpop.permute.xlu1 %336 }
  0xaa   : > { %v367_v18 = vpop.permute.xlu0 %366  ;;  %v341_v21 = vsel %vm340_vm4, %v335_v17, %v337_v20  ;;  %v342_v22 = vsel %vm340_vm4, %v337_v20, %v339_v53 }
  0xab   : > { %v373_v19 = vsel %vm372_vm2, %v367_v18, %v369_v10  ;;  %345 = vst [vmem:[#allocation3] sm:$0x38] %v341_v21  ;;  %346 = vst [vmem:[#allocation3 + $0x8] sm:$0x38] %v342_v22  ;;  %829 = vperm.xlu1 %1868, %v823_v25  }
  0xac   : > { %377 = vst [vmem:[#allocation3 + $0x10] sm:$0xe] %v373_v19  ;;  %834 = vperm.xlu0 %1869, %v824_v28  }
  0xad   : > { %v386_v26 = vpop.permute.xlu1 %385 }
  0xae   : > { %v407_v23 = vpop.permute.xlu0 %406  ;;  %v392_v29 = vsel %vm391_vm1, %v386_v26, %v2056_v51 }
  0xaf   : > { %v413_v24 = vsel %vm412_vm3, %v407_v23, %v409_v14  ;;  %396 = vst [vmem:[#allocation3 + $0x10] sm:$0x70] %v392_v29  ;;  %v806_v35 = vld [vmem:[#allocation3 + $0x18] sm:$0xff]  ;;  %839 = vperm.xlu1 %1868, %v825_v31   ;;  %vm662_vm3 = vcmask 261120  }
  0xb0   : > { %417 = vst [vmem:[#allocation3 + $0x20] ss:$-12 sps:$4 sm:$0x83] %v413_v24  }
  0xb1   : > { %v432_v32 = vpop.permute.xlu1 %431 }
  0xb2   : > { %v434_v30 = vpop.permute.xlu0 %433  ;;  %v804_v34 = vld [vmem:[#allocation3 + $0x8] sm:$0xff]  ;;  %v803_v41 = vld [vmem:[#allocation3] sm:$0xff] }
  0xb3   : > { %v437_v33 = vsel %vm435_vm5, %v432_v32, %v434_v30  ;;  %v1773_v37 = vpack.c.bf16 %v806_v35, %v804_v34  ;;  %844 = vperm.xlu1 %1868, %v826_v38  }
  0xb4   : > { %441 = vst [vmem:[#allocation3 + $0x28] sm:$0x1c] %v437_v33 }
  0xb5   : > { %v453_v39 = vpop.permute.xlu1 %452  ;;  %1774 = vmatprep.subr.bf16.mxu0 %v1773_v37  ;;  %1795 = vmatprep.subr.bf16.mxu1 %v1773_v37 }
  0xb6   : > { %v455_v36 = vpop.permute.xlu0 %454 }
  0xb7   : > { %v458_v40 = vsel %vm456_vm6, %v453_v39, %v455_v36  ;;  %v805_v42 = vld [vmem:[#allocation3 + $0x10] sm:$0xff] }
  0xb8   : > { %462 = vst [vmem:[#allocation3 + $0x28] sm:$0xe0] %v458_v40  ;;  %v1775_v44 = vpack.c.bf16 %v805_v42, %v803_v41 }
  0xb9   : > { %v471_v45 = vpop.permute.xlu1 %470 }
  0xba   : > { %v473_v43 = vpop.permute.xlu0 %472  ;;  %1776 = vmatpush1.bf16.msra.mxu0 %v1775_v44  ;;  %1800 = vmatpush1.bf16.msra.mxu1 %v1775_v44 }
  0xbb   : > { %v476_v46 = vsel %vm474_vm7, %v471_v45, %v473_v43 }
  0xbc   : > { %480 = vst [vmem:[#allocation3 + $0x38] sm:$0x7] %v476_v46 }
  0xbd   : > { %v492_v48 = vpop.permute.xlu1 %491 }
  0xbe   : > { %v494_v47 = vpop.permute.xlu0 %493 }
  0xbf   : > { %v497_v49 = vsel %vm495_vm8, %v492_v48, %v494_v47  ;;  %v808_v61 = vld [vmem:[#allocation3 + $0x28] sm:$0xff] }
  0xc0   : > { %501 = vst [vmem:[#allocation3 + $0x38] sm:$0x38] %v497_v49 }
  0xc1   : > { %v513_v51 = vpop.permute.xlu1 %512 }
  0xc2   : > { %v515_v50 = vpop.permute.xlu0 %514 }
  0xc3   : > { %v518_v52 = vsel %vm516_vm9, %v513_v51, %v515_v50 }
  0xc4   : > { %522 = vst [vmem:[#allocation3 + $0x48] ss:$-12 sps:$4 sm:$0xc1] %v518_v52  }
  0xc5   : > { %v430_v55 = vpop.permute.xlu1 %429 }
  0xc6   : > { %v451_v53 = vpop.permute.xlu0 %450  ;;  %v436_v56 = vsel %vm435_vm5, %v430_v55, %v432_v32  ;;  %vm683_vm5 = vcmask 252928  }
  0xc7   : > { %v457_v54 = vsel %vm456_vm6, %v451_v53, %v453_v39  ;;  %440 = vst [vmem:[#allocation3 + $0x20] sm:$0x1c] %v436_v56  ;;  %vm706_vm6 = vcmask 244736  }
  0xc8   : > { %461 = vst [vmem:[#allocation3 + $0x20] sm:$0xe0] %v457_v54 }
  0xc9   : > { %v469_v59 = vpop.permute.xlu1 %468 }
  0xca   : > { %v490_v57 = vpop.permute.xlu0 %489  ;;  %v475_v60 = vsel %vm474_vm7, %v469_v59, %v471_v45 }
  0xcb   : > { %v496_v58 = vsel %vm495_vm8, %v490_v57, %v492_v48  ;;  %v810_v62 = vld [vmem:[#allocation3 + $0x38] sm:$0xff]  ;;  %479 = vst [vmem:[#allocation3 + $0x30] sm:$0x7] %v475_v60  ;;  %vm1120_vm8 = vcmask 1044480  }
  0xcc   : > { %500 = vst [vmem:[#allocation3 + $0x30] sm:$0x38] %v496_v58  ;;  %v1777_v1 = vpack.c.bf16 %v810_v62, %v808_v61 }
  0xcd   : > { %v511_v2 = vpop.permute.xlu1 %510 }
  0xce   : > { %v536_v63 = vpop.permute.xlu0 %535  ;;  %1778 = vmatprep.subr.bf16.mxu0 %v1777_v1  ;;  %1796 = vmatprep.subr.bf16.mxu1 %v1777_v1  ;;  %v517_v3 = vsel %vm516_vm9, %v511_v2, %v513_v51 }
  0xcf   : > { %521 = vst [vmem:[#allocation3 + $0x40] ss:$-12 sps:$4 sm:$0xc1] %v517_v3   ;;  %v807_v10 = vld [vmem:[#allocation3 + $0x20] sm:$0xff] }
  0xd1   : > { %v538_v5 = vpop.permute.xlu1 %537 }
  0xd2   : > { %v555_v4 = vpop.permute.xlu0 %554  ;;  %v541_v6 = vsel %vm539_vm10, %v536_v63, %v538_v5 }
  0xd3   : > { %545 = vst [vmem:[#allocation3 + $0x48] sm:$0xe] %v541_v6 }
  0xd5   : > { %v557_v8 = vpop.permute.xlu1 %556 }
  0xd6   : > { %v576_v7 = vpop.permute.xlu0 %575  ;;  %v560_v9 = vsel %vm558_vm11, %v555_v4, %v557_v8  ;;  %v809_v11 = vld [vmem:[#allocation3 + $0x30] sm:$0xff] }
  0xd7   : > { %564 = vst [vmem:[#allocation3 + $0x48] sm:$0x70] %v560_v9  ;;  %v1779_v13 = vpack.c.bf16 %v809_v11, %v807_v10 }
  0xd9   : > { %v578_v14 = vpop.permute.xlu1 %577  ;;  %1780 = vmatpush1.bf16.msra.mxu0 %v1779_v13  ;;  %1801 = vmatpush1.bf16.msra.mxu1 %v1779_v13 }
  0xda   : > { %v599_v12 = vpop.permute.xlu0 %598  ;;  %v581_v15 = vsel %vm579_vm12, %v576_v7, %v578_v14 }
  0xdb   : > { %585 = vst [vmem:[#allocation3 + $0x58] ss:$-12 sps:$4 sm:$0x83] %v581_v15  }
  0xdd   : > { %v601_v17 = vpop.permute.xlu1 %600 }
  0xde   : > { %v620_v16 = vpop.permute.xlu0 %619  ;;  %v604_v18 = vsel %vm602_vm13, %v599_v12, %v601_v17 }
  0xdf   : > { %608 = vst [vmem:[#allocation3 + $0x58] sm:$0x1c] %v604_v18 }
  0xe1   : > { %v622_v21 = vpop.permute.xlu1 %621 }
  0xe2   : > { %v534_v19 = vpop.permute.xlu0 %533  ;;  %v625_v22 = vsel %vm623_vm14, %v620_v16, %v622_v21  ;;  %v812_v31 = vld [vmem:[#allocation3 + $0x48] sm:$0xff] }
  0xe3   : > { %v540_v20 = vsel %vm539_vm10, %v534_v19, %v536_v63  ;;  %629 = vst [vmem:[#allocation3 + $0x58] sm:$0xe0] %v625_v22 }
  0xe4   : > { %544 = vst [vmem:[#allocation3 + $0x40] sm:$0xe] %v540_v20 }
  0xe5   : > { %v553_v25 = vpop.permute.xlu1 %552 }
  0xe6   : > { %v574_v23 = vpop.permute.xlu0 %573  ;;  %v559_v26 = vsel %vm558_vm11, %v553_v25, %v555_v4 }
  0xe7   : > { %v580_v24 = vsel %vm579_vm12, %v574_v23, %v576_v7  ;;  %563 = vst [vmem:[#allocation3 + $0x40] sm:$0x70] %v559_v26  ;;  %v799_v26 = vld [vmem:[%s2257_s0] sm:$0xff] }
  0xe8   : > { %584 = vst [vmem:[#allocation3 + $0x50] ss:$-12 sps:$4 sm:$0x83] %v580_v24  }
  0xe9   : > { %v597_v29 = vpop.permute.xlu1 %596 }
  0xea   : > { %v618_v27 = vpop.permute.xlu0 %617  ;;  %v603_v30 = vsel %vm602_vm13, %v597_v29, %v599_v12  ;;  %v814_v32 = vld [vmem:[#allocation3 + $0x58] sm:$0xff]  ;;  %v802_v29 = vld [vmem:[%s2257_s0 + $0x18] sm:$0x1] }
  0xeb   : > { %v624_v28 = vsel %vm623_vm14, %v618_v27, %v620_v16  ;;  %607 = vst [vmem:[#allocation3 + $0x50] sm:$0x1c] %v603_v30  ;;  %v1781_v34 = vpack.c.bf16 %v814_v32, %v812_v31  ;;  %v801_v27 = vld [vmem:[%s2257_s0 + $0x10] sm:$0xff] }
  0xec   : > { %628 = vst [vmem:[#allocation3 + $0x50] sm:$0xe0] %v624_v28  ;;  %v800_v28 = vld [vmem:[%s2257_s0 + $0x8] sm:$0xff] }
  0xed   : > { %v638_v35 = vpop.permute.xlu1 %637  ;;  %1782 = vmatprep.subr.bf16.mxu0 %v1781_v34  ;;  %1797 = vmatprep.subr.bf16.mxu1 %v1781_v34  ;;  %v970_v34 = vlaneseq }
  0xee   : > { %v640_v33 = vpop.permute.xlu0 %639 }
  0xef   : > { %v643_v36 = vsel %vm641_vm15, %v638_v35, %v640_v33  ;;  %v811_v40 = vld [vmem:[#allocation3 + $0x40] sm:$0xff] }
  0xf0   : > { %647 = vst [vmem:[#allocation3 + $0x68] sm:$0x7] %v643_v36 }
  0xf1   : > { %v659_v38 = vpop.permute.xlu1 %658 }
  0xf2   : > { %v661_v37 = vpop.permute.xlu0 %660 }
  0xf3   : > { %v664_v39 = vsel %vm662_vm3, %v659_v38, %v661_v37  ;;  %v813_v41 = vld [vmem:[#allocation3 + $0x50] sm:$0xff] }
  0xf4   : > { %668 = vst [vmem:[#allocation3 + $0x68] sm:$0x38] %v664_v39  ;;  %v1783_v43 = vpack.c.bf16 %v813_v41, %v811_v40 }
  0xf5   : > { %v680_v44 = vpop.permute.xlu1 %679 }
  0xf6   : > { %v682_v42 = vpop.permute.xlu0 %681  ;;  %1784 = vmatpush1.bf16.msra.mxu0 %v1783_v43  ;;  %1802 = vmatpush1.bf16.msra.mxu1 %v1783_v43 }
  0xf7   : > { %v685_v45 = vsel %vm683_vm5, %v680_v44, %v682_v42  ;;  %v971_v42 = vshrl.u32 %v970_v34, 7  ;;  %v1051_v34 = vld [vmem:[#allocation3 + $0x10] sm:$0xe] }
  0xf8   : > { %689 = vst [vmem:[#allocation3 + $0x78] ss:$-12 sps:$4 sm:$0xc1] %v685_v45  }
  0xf9   : > { %v703_v47 = vpop.permute.xlu1 %702 }
  0xfa   : > { %v705_v46 = vpop.permute.xlu0 %704 }
  0xfb   : > { %v708_v48 = vsel %vm706_vm6, %v703_v47, %v705_v46 }
  0xfc   : > { %712 = vst [vmem:[#allocation3 + $0x78] sm:$0xe] %v708_v48 }
  0xfd   : > { %v722_v50 = vpop.permute.xlu1 %721 }
  0xfe   : > { %v724_v49 = vpop.permute.xlu0 %723 }
  0xff   : > { %v726_v51 = vsel %vm319_vm0, %v722_v50, %v724_v49  ;;  %v816_v63 = vld [vmem:[#allocation3 + $0x68] sm:$0xff] }
 0x100   : > { %730 = vst [vmem:[#allocation3 + $0x78] sm:$0x70] %v726_v51  ;;  %v2140_v51 = vsub.s32 0, %v971_v42 }
 0x101   : > { %v742_v53 = vpop.permute.xlu1 %741 }
 0x102   : > { %v744_v52 = vpop.permute.xlu0 %743 }
 0x103   : > { %v746_v54 = vsel %vm340_vm4, %v742_v53, %v744_v52  ;;  %v2142_v52 = vsub.s32 1, %v971_v42 }
 0x104   : > { %750 = vst [vmem:[#allocation3 + $0x88] ss:$-12 sps:$4 sm:$0x83] %v746_v54  }
 0x105   : > { %v636_v57 = vpop.permute.xlu1 %635 }
 0x106   : > { %v657_v55 = vpop.permute.xlu0 %656  ;;  %v642_v58 = vsel %vm641_vm15, %v636_v57, %v638_v35 }
 0x107   : > { %v663_v56 = vsel %vm662_vm3, %v657_v55, %v659_v38  ;;  %646 = vst [vmem:[#allocation3 + $0x60] sm:$0x7] %v642_v58 }
 0x108   : > { %667 = vst [vmem:[#allocation3 + $0x60] sm:$0x38] %v663_v56 }
 0x109   : > { %v678_v61 = vpop.permute.xlu1 %677 }
 0x10a   : > { %v701_v59 = vpop.permute.xlu0 %700  ;;  %v684_v62 = vsel %vm683_vm5, %v678_v61, %v680_v44  ;;  %v967_v61 = vld [vmem:[#allocation3 + $0x8] sm:$0x7] }
 0x10b   : > { %v707_v60 = vsel %vm706_vm6, %v701_v59, %v703_v47  ;;  %v818_v1 = vld [vmem:[#allocation3 + $0x78] sm:$0xff]  ;;  %688 = vst [vmem:[#allocation3 + $0x70] ss:$-12 sps:$4 sm:$0xc1] %v684_v62   ;;  %v1015_v62 = vld [vmem:[#allocation3] sm:$0xc0] }
 0x10c   : > { %711 = vst [vmem:[#allocation3 + $0x70] sm:$0xe] %v707_v60  ;;  %v1785_v3 = vpack.c.bf16 %v818_v1, %v816_v63  ;;  %v966_v60 = vld [vmem:[#allocation3] sm:$0x7] }
 0x10d   : > { %v720_v5 = vpop.permute.xlu1 %719 }
 0x10e   : > { %v740_v2 = vpop.permute.xlu0 %739  ;;  %1786 = vmatprep.subr.bf16.mxu0 %v1785_v3  ;;  %1798 = vmatprep.subr.bf16.mxu1 %v1785_v3  ;;  %v725_v6 = vsel %vm319_vm0, %v720_v5, %v722_v50  ;;  %vm860_vm0 = vcmask 1042432   ;;  %v1017_v5 = vld [vmem:[#allocation3 + $0x10] sm:$0x1] }
 0x10f   : > { %v745_v4 = vsel %vm340_vm4, %v740_v2, %v742_v53  ;;  %729 = vst [vmem:[#allocation3 + $0x70] sm:$0x70] %v725_v6  ;;  %vm1959_vm4 = vmmov 1   ;;  %v1018_v6 = vld [vmem:[#allocation3 + $0x18] sm:$0x1] }
 0x110   : > { %749 = vst [vmem:[#allocation3 + $0x80] ss:$-12 sps:$4 sm:$0x83] %v745_v4   ;;  %vm1790_vm7 = vmpackc.low %vm860_vm0, %vm1959_vm4  ;;  %v1016_v4 = vld [vmem:[#allocation3 + $0x8] sm:$0xc0] }
 0x111   : > { %v773_v8 = vpop.permute.xlu1 %772 }
 0x112   : > { %v775_v7 = vpop.permute.xlu0 %774  ;;  %v815_v13 = vld [vmem:[#allocation3 + $0x60] sm:$0xff] }
 0x113   : > { %v777_v9 = vsel %vm372_vm2, %v773_v8, %v775_v7  ;;  %v990_v7 = vld [vmem:[#allocation3] sm:$0x38] }
 0x114   : > { %781 = vst [vmem:[#allocation3 + $0x88] sm:$0xe0] %v777_v9  ;;  %v2150_v9 = vld [vmem:[#allocation3 + $0x48] sm:$0x70] }
 0x115   : > { %v790_v11 = vpop.permute.xlu1 %789 }
 0x116   : > { %v792_v10 = vpop.permute.xlu0 %791 }
 0x117   : > { %v794_v12 = vsel %vm391_vm1, %v790_v11, %v792_v10  ;;  %v817_v14 = vld [vmem:[#allocation3 + $0x70] sm:$0xff] }
 0x118   : > { %798 = vst [vmem:[#allocation3 + $0x98] sm:$0x7] %v794_v12  ;;  %v1787_v16 = vpack.c.bf16 %v817_v14, %v815_v13  ;;  %v2152_v14 = vld [vmem:[#allocation3 + $0x40] sm:$0x70] }
 0x119   : > { %v771_v18 = vpop.permute.xlu1 %770 }
 0x11a   : > { %v788_v15 = vpop.permute.xlu0 %787  ;;  %1788 = vmatpush1.bf16.msra.mxu0 %v1787_v16  ;;  %1803 = vmatpush1.bf16.msra.mxu1 %v1787_v16  ;;  %v776_v19 = vsel %vm372_vm2, %v771_v18, %v773_v8  ;;  %v991_v8 = vld [vmem:[#allocation3 + $0x8] sm:$0x38]  ;;  %vm1040_vm2 = vcmask 1045504  }
 0x11b   : > { %v793_v17 = vsel %vm391_vm1, %v788_v15, %v790_v11  ;;  %780 = vst [vmem:[#allocation3 + $0x80] sm:$0xe0] %v776_v19  ;;  %v820_v20 = vld [vmem:[#allocation3 + $0x88] sm:$0xff]  ;;  %vm847_vm1 = vcmask 613376  }
 0x11c   : > { %797 = vst [vmem:[#allocation3 + $0x90] sm:$0x7] %v793_v17 }
 0x11f   : > { %v822_v21 = vld [vmem:[#allocation3 + $0x98] sm:$0x7] }
 0x120   : > { %v1789_v22 = vpack.c.bf16 %v822_v21, %v820_v20 }
 0x122   : > { %1791 = vmatprep.subr.msk.bf16.mxu0 %vm1790_vm7, %v1789_v22  ;;  %1799 = vmatprep.subr.msk.bf16.mxu1 %vm1790_vm7, %v1789_v22  ;;  %v819_v24 = vld [vmem:[#allocation3 + $0x80] sm:$0xff] }
 0x123   : > { %v821_v23 = vld [vmem:[#allocation3 + $0x90] sm:$0x7] }
 0x124   : > { %v1792_v25 = vpack.c.bf16 %v821_v23, %v819_v24 }
 0x126   : > { %1794 = vmatpush1.bf16.msk.msra.mxu0 %vm1790_vm7, %v1792_v25  ;;  %1804 = vmatpush1.bf16.msk.msra.mxu1 %vm1790_vm7, %v1792_v25 }
 0x129   : > { %1761 = vmatmul.mubr.msk.f32.vlgmr.msra.gmra.mrb[0].mxu0 %vm847_vm1, %v799_v26  ;;  %1763 = vmatmul.mubr.msk.f32.vlgmr.msra.gmra.mrb[0].mxu1 %vm847_vm1, %v801_v27 }
 0x12a   : > { %937 = vmatprep.mubr.f32.mxu0 %v1938_v0  ;;  %949 = vmatprep.mubr.f32.mxu1 %v1938_v0  ;;  %v830_v30 = vpop.permute.xlu1 %829 }
 0x12b   : > { %v835_v40 = vpop.permute.xlu0 %834 }
 0x12d   : > { %1762 = vmatmul.mubr.msk.f32.gmra.mrb[2].mxu0 %vm847_vm1, %v800_v28  ;;  %1764 = vmatmul.mubr.msk.f32.gmra.mrb[2].mxu1 %vm847_vm1, %v802_v29 }
 0x12e   : > { %v840_v31 = vpop.permute.xlu1 %839 }
 0x132   : > { %v845_v41 = vpop.permute.xlu1 %844 }
 0x1fc   : > { %v933_v32 = vpop.f32.mrb[0].mxu0  ;;  %v945_v33 = vpop.f32.mrb[0].mxu1 }
 0x1fd   : > { %v934_v35 = vadd.f32 %v933_v32, %v830_v30  ;;  %v946_v36 = vadd.f32 %v945_v33, %v840_v31  ;;  %v935_v37 = vpop.f32.mrb[1].mxu0  ;;  %v947_v38 = vpop.f32.mrb[1].mxu1  ;;  %v1052_v33 = vld [vmem:[#allocation3 + $0x18] sm:$0xe] }
 0x1fe   : > { %v936_v0 = vadd.f32 %v935_v37, %v830_v30  ;;  %v948_v39 = vadd.f32 %v947_v38, %v840_v31 }
 0x1ff   : > { %956 = vst [vmem:[#allocation4] sm:$0xff] %v934_v35  ;;  %960 = vst [vmem:[#allocation4 + $0x20] sm:$0xff] %v946_v36 }
 0x200   : > { %957 = vst [vmem:[#allocation4 + $0x8] sm:$0xff] %v936_v0  ;;  %961 = vst [vmem:[#allocation4 + $0x28] sm:$0xff] %v948_v39  ;;  %v939_v43 = vpop.f32.mrb[2].mxu0  ;;  %v951_v44 = vpop.f32.mrb[2].mxu1 }
 0x201   : > { %v952_v45 = vadd.f32 %v951_v44, %v845_v41  ;;  %v941_v46 = vpop.f32.mrb[3].mxu0  ;;  %v953_v47 = vpop.f32.mrb[3].mxu1  ;;  %v940_v48 = vadd.f32 %v939_v43, %v835_v40  ;;  %v1098_v44 = vld [vmem:[#allocation3 + $0x28] sm:$0x3] }
 0x202   : > { %v954_v49 = vadd.f32 %v953_v47, %v845_v41  ;;  %v942_v50 = vadd.f32 %v941_v46, %v835_v40  ;;  %v1096_v41 = vld [vmem:[#allocation3 + $0x18] sm:$0x80]  ;;  %v1097_v46 = vld [vmem:[#allocation3 + $0x20] sm:$0x3] }
 0x203   : > { %962 = vst [vmem:[#allocation4 + $0x30] sm:$0x1] %v952_v45  ;;  %958 = vst [vmem:[#allocation4 + $0x10] sm:$0xff] %v940_v48  ;;  %v1095_v45 = vld [vmem:[#allocation3 + $0x10] sm:$0x80] }
 0x204   : > { %963 = vst [vmem:[#allocation4 + $0x38] sm:$0x1] %v954_v49  ;;  %959 = vst [vmem:[#allocation4 + $0x18] sm:$0xff] %v942_v50 }
 0x207   : > { %v968_v53 = vld [vmem:[#allocation4] ss:$8 sm:$0x3]  ;;  %v993_v54 = vld [vmem:[#allocation4 + $0x1] ss:$8 sm:$0x3] }
 0x208   : > { %v973_v55 = vrot.slane %v968_v53, %v2140_v51  ;;  %v977_v56 = vrot.slane %v968_v53, %v2142_v52  ;;  %v998_v57 = vrot.slane %v993_v54, %v2140_v51  ;;  %v1002_v58 = vrot.slane %v993_v54, %v2142_v52  ;;  %v1020_v59 = vld [vmem:[#allocation4 + $0x2] ss:$8 sm:$0x3]  ;;  %v1054_v19 = vld [vmem:[#allocation4 + $0x3] ss:$8 sm:$0x3] }
 0x209   : > { %v1025_v63 = vrot.slane %v1020_v59, %v2140_v51  ;;  %v1029_v1 = vrot.slane %v1020_v59, %v2142_v52  ;;  %v1059_v24 = vrot.slane %v1054_v19, %v2140_v51  ;;  %v1063_v25 = vrot.slane %v1054_v19, %v2142_v52  ;;  %v1100_v32 = vld [vmem:[#allocation4 + $0x5] ss:$8 sm:$0x3]  ;;  %v1079_v0 = vld [vmem:[#allocation4 + $0x4] ss:$8 sm:$0x3] }
 0x20a   : > { %v980_v2 = vmul.f32 %v973_v55, %v966_v60  ;;  %v981_v3 = vmul.f32 %v977_v56, %v967_v61  ;;  %v1005_v12 = vmul.f32 %v998_v57, %v990_v7  ;;  %v1006_v13 = vmul.f32 %v1002_v58, %v991_v8  ;;  %v1134_v53 = vld [vmem:[#allocation4 + $0x6] ss:$8 sm:$0x3]  ;;  %v1077_v60 = vld [vmem:[#allocation3 + $0x18] sm:$0x70] }
 0x20b   : > { %v1032_v15 = vmul.f32 %v1025_v63, %v1015_v62  ;;  %v1033_v16 = vmul.f32 %v1029_v1, %v1016_v4  ;;  %v1034_v17 = vmul.f32 %v1025_v63, %v1017_v5  ;;  %v1035_v18 = vmul.f32 %v1029_v1, %v1018_v6  ;;  %v1076_v61 = vld [vmem:[#allocation3 + $0x10] sm:$0x70]  ;;  %v1132_v4 = vld [vmem:[#allocation3 + $0x28] sm:$0x1c] }
 0x20c   : > { %v984_v10 = vrot.slane %v980_v2, 4  ;;  %v985_v11 = vrot.slane %v981_v3, 4  ;;  %v1009_v22 = vrot.slane %v1005_v12, 7  ;;  %v1010_v23 = vrot.slane %v1006_v13, 7 }
 0x20d   : > { %v1041_v26 = vrot.slane %v1032_v15, 2  ;;  %v1042_v27 = vrot.slane %v1034_v17, 2  ;;  %v1044_v28 = vrot.slane %v1033_v16, 2  ;;  %v1045_v29 = vrot.slane %v1035_v18, 2 }
 0x20e   : > { %v988_v20 = vadd.f32 %v984_v10, %v2152_v14  ;;  %v989_v21 = vadd.f32 %v985_v11, %v2150_v9  ;;  %v1066_v35 = vmul.f32 %v1059_v24, %v1051_v34  ;;  %v1067_v36 = vmul.f32 %v1063_v25, %v1052_v33  ;;  %v1159_v3 = vld [vmem:[#allocation4 + $0x7] ss:$8 sm:$0x3]  ;;  %v1131_v10 = vld [vmem:[#allocation3 + $0x20] sm:$0x1c] }
 0x20f   : > { %v1043_v37 = vsel %vm1040_vm2, %v1041_v26, %v1042_v27  ;;  %v1046_v38 = vsel %vm1040_vm2, %v1044_v28, %v1045_v29  ;;  %v1105_v39 = vrot.slane %v1100_v32, %v2140_v51  ;;  %v1109_v40 = vrot.slane %v1100_v32, %v2142_v52  ;;  %v1396_v13 = vld [vmem:[#allocation4 + $0x20] ss:$8 sm:$0x3]  ;;  %v1157_v26 = vld [vmem:[#allocation3 + $0x28] sm:$0xe0] }
 0x210   : > { %v1013_v30 = vadd.f32 %v1009_v22, %v988_v20  ;;  %v1014_v31 = vadd.f32 %v1010_v23, %v989_v21  ;;  %v1070_v47 = vrot.slane %v1066_v35, 5  ;;  %v1071_v48 = vrot.slane %v1067_v36, 5  ;;  %v1421_v23 = vld [vmem:[#allocation4 + $0x21] ss:$8 sm:$0x3] }
 0x211   : > { %v1084_v49 = vrot.slane %v1079_v0, %v2140_v51  ;;  %v1088_v50 = vrot.slane %v1079_v0, %v2142_v52  ;;  %v1112_v54 = vmul.f32 %v1105_v39, %v1095_v45  ;;  %v1113_v55 = vmul.f32 %v1109_v40, %v1096_v41  ;;  %v1156_v27 = vld [vmem:[#allocation3 + $0x20] sm:$0xe0] }
 0x212   : > { %v1049_v42 = vadd.f32 %v1043_v37, %v1013_v30  ;;  %v1050_v43 = vadd.f32 %v1046_v38, %v1014_v31  ;;  %v1114_v56 = vmul.f32 %v1105_v39, %v1097_v46  ;;  %v1115_v57 = vmul.f32 %v1109_v40, %v1098_v44  ;;  %v1394_v30 = vld [vmem:[#allocation3 + $0x68] sm:$0x7]  ;;  %v1393_v31 = vld [vmem:[#allocation3 + $0x60] sm:$0x7]  ;;  %v1419_v38 = vld [vmem:[#allocation3 + $0x68] sm:$0x38] }
 0x213   : > { %v1139_v62 = vrot.slane %v1134_v53, %v2140_v51  ;;  %v1143_v63 = vrot.slane %v1134_v53, %v2142_v52  ;;  %v1091_v1 = vmul.f32 %v1084_v49, %v1076_v61  ;;  %v1092_v2 = vmul.f32 %v1088_v50, %v1077_v60  ;;  %v1184_v40 = vld [vmem:[#allocation4 + $0x10] ss:$8 sm:$0x3]  ;;  %v1418_v41 = vld [vmem:[#allocation3 + $0x60] sm:$0x38] }
 0x214   : > { %v1074_v58 = vadd.f32 %v1070_v47, %v1049_v42  ;;  %v1075_v59 = vadd.f32 %v1071_v48, %v1050_v43  ;;  %v1121_v5 = vrot.slane %v1112_v54, 3  ;;  %v1122_v6 = vrot.slane %v1114_v56, 3  ;;  %v1209_v42 = vld [vmem:[#allocation4 + $0x11] ss:$8 sm:$0x3] }
 0x215   : > { %v1124_v7 = vrot.slane %v1113_v55, 3  ;;  %v1125_v8 = vrot.slane %v1115_v57, 3  ;;  %v1146_v15 = vmul.f32 %v1139_v62, %v1131_v10  ;;  %v1147_v16 = vmul.f32 %v1143_v63, %v1132_v4  ;;  %v1236_v47 = vld [vmem:[#allocation4 + $0x12] ss:$8 sm:$0x3] }
 0x216   : > { %v1093_v11 = vadd.f32 %v1091_v1, %v1074_v58  ;;  %v1094_v12 = vadd.f32 %v1092_v2, %v1075_v59  ;;  %v1164_v17 = vrot.slane %v1159_v3, %v2140_v51  ;;  %v1168_v18 = vrot.slane %v1159_v3, %v2142_v52  ;;  %v1448_v50 = vld [vmem:[#allocation4 + $0x22] ss:$8 sm:$0x3]  ;;  %v1182_v55 = vld [vmem:[#allocation3 + $0x38] sm:$0x7] }
 0x217   : > { %v1123_v19 = vsel %vm1120_vm8, %v1121_v5, %v1122_v6  ;;  %v1126_v20 = vsel %vm1120_vm8, %v1124_v7, %v1125_v8  ;;  %v1401_v21 = vrot.slane %v1396_v13, %v2140_v51  ;;  %v1405_v22 = vrot.slane %v1396_v13, %v2142_v52  ;;  %v1181_v56 = vld [vmem:[#allocation3 + $0x30] sm:$0x7]  ;;  %v1207_v61 = vld [vmem:[#allocation3 + $0x38] sm:$0x38]  ;;  %v1232_v62 = vld [vmem:[#allocation3 + $0x38] sm:$0xc0] }
 0x218   : > { %v1129_v24 = vadd.f32 %v1123_v19, %v1093_v11  ;;  %v1130_v25 = vadd.f32 %v1126_v20, %v1094_v12  ;;  %v1150_v28 = vrot.slane %v1146_v15, 6  ;;  %v1151_v29 = vrot.slane %v1147_v16, 6  ;;  %v1206_v63 = vld [vmem:[#allocation3 + $0x30] sm:$0x38]  ;;  %v1234_v5 = vld [vmem:[#allocation3 + $0x48] sm:$0x1] }
 0x219   : > { %v1171_v32 = vmul.f32 %v1164_v17, %v1156_v27  ;;  %v1172_v33 = vmul.f32 %v1168_v18, %v1157_v26  ;;  %v1426_v34 = vrot.slane %v1421_v23, %v2140_v51  ;;  %v1430_v35 = vrot.slane %v1421_v23, %v2142_v52  ;;  %v1231_v6 = vld [vmem:[#allocation3 + $0x30] sm:$0xc0]  ;;  %v1233_v7 = vld [vmem:[#allocation3 + $0x40] sm:$0x1] }
 0x21a   : > { %v2174_v36 = vmul.f32 %v1401_v21, %v1393_v31  ;;  %v2176_v37 = vmul.f32 %v1405_v22, %v1394_v30  ;;  %v1154_v0 = vadd.f32 %v1150_v28, %v1129_v24  ;;  %v1155_v39 = vadd.f32 %v1151_v29, %v1130_v25  ;;  %v1269_v18 = vld [vmem:[#allocation4 + $0x13] ss:$8 sm:$0x3]  ;;  %v1292_v23 = vld [vmem:[#allocation4 + $0x14] ss:$8 sm:$0x3] }
 0x21b   : > { %v1175_v43 = vrot.slane %v1171_v32, 1  ;;  %v1176_v44 = vrot.slane %v1172_v33, 1  ;;  %v2178_v45 = vmul.f32 %v1426_v34, %v1418_v41  ;;  %v2180_v46 = vmul.f32 %v1430_v35, %v1419_v38  ;;  %v1267_v28 = vld [vmem:[#allocation3 + $0x48] sm:$0xe]  ;;  %v1266_v33 = vld [vmem:[#allocation3 + $0x40] sm:$0xe] }
 0x21c   : > { %v1412_v48 = vrot.slane %v2174_v36, 4  ;;  %v1413_v49 = vrot.slane %v2176_v37, 4  ;;  %v1189_v53 = vrot.slane %v1184_v40, %v2140_v51  ;;  %v1193_v54 = vrot.slane %v1184_v40, %v2142_v52  ;;  %v1610_v36 = vld [vmem:[#allocation4 + $0x30] ss:$8 sm:$0x3] }
 0x21d   : > { %v1179_v57 = vadd.f32 %v1175_v43, %v1154_v0  ;;  %v1180_v58 = vadd.f32 %v1176_v44, %v1155_v39  ;;  %v1214_v59 = vrot.slane %v1209_v42, %v2140_v51  ;;  %v1218_v60 = vrot.slane %v1209_v42, %v2142_v52  ;;  %v1313_v39 = vld [vmem:[#allocation4 + $0x15] ss:$8 sm:$0x3]  ;;  %v1346_v44 = vld [vmem:[#allocation4 + $0x16] ss:$8 sm:$0x3] }
 0x21e   : > { %v1196_v1 = vmul.f32 %v1189_v53, %v1181_v56  ;;  %v1197_v2 = vmul.f32 %v1193_v54, %v1182_v55  ;;  %v1241_v3 = vrot.slane %v1236_v47, %v2140_v51  ;;  %v1245_v4 = vrot.slane %v1236_v47, %v2142_v52  ;;  %v1371_v47 = vld [vmem:[#allocation4 + $0x17] ss:$8 sm:$0x3] }
 0x21f   : > { %v2191_v8 = vrot.slane %v1448_v50, %v2140_v51  ;;  %v2194_v10 = vrot.slane %v1448_v50, %v2142_v52  ;;  %v1221_v11 = vmul.f32 %v1214_v59, %v1206_v63  ;;  %v1222_v12 = vmul.f32 %v1218_v60, %v1207_v61  ;;  %v1309_v60 = vld [vmem:[#allocation3 + $0x48] sm:$0x80]  ;;  %v1311_v61 = vld [vmem:[#allocation3 + $0x58] sm:$0x3] }
 0x220   : > { %v1200_v13 = vrot.slane %v1196_v1, 4  ;;  %v1201_v15 = vrot.slane %v1197_v2, 4  ;;  %v1248_v16 = vmul.f32 %v1241_v3, %v1231_v6  ;;  %v1249_v17 = vmul.f32 %v1245_v4, %v1232_v62  ;;  %v1308_v62 = vld [vmem:[#allocation3 + $0x40] sm:$0x80] }
 0x221   : > { %v1225_v19 = vrot.slane %v1221_v11, 7  ;;  %v1226_v20 = vrot.slane %v1222_v12, 7  ;;  %v1250_v21 = vmul.f32 %v1241_v3, %v1233_v7  ;;  %v1251_v22 = vmul.f32 %v1245_v4, %v1234_v5  ;;  %v1310_v4 = vld [vmem:[#allocation3 + $0x50] sm:$0x3]  ;;  %v1369_v12 = vld [vmem:[#allocation3 + $0x58] sm:$0xe0] }
 0x222   : > { %v1204_v24 = vadd.f32 %v1200_v13, %v1179_v57  ;;  %v1205_v25 = vadd.f32 %v1201_v15, %v1180_v58  ;;  %v1256_v26 = vrot.slane %v1248_v16, 2  ;;  %v1259_v27 = vrot.slane %v1249_v17, 2  ;;  %v1368_v13 = vld [vmem:[#allocation3 + $0x50] sm:$0xe0]  ;;  %v1444_v15 = vld [vmem:[#allocation3 + $0x68] sm:$0xc0] }
 0x223   : > { %v1257_v29 = vrot.slane %v1250_v21, 2  ;;  %v1260_v30 = vrot.slane %v1251_v22, 2  ;;  %v1274_v31 = vrot.slane %v1269_v18, %v2140_v51  ;;  %v1278_v32 = vrot.slane %v1269_v18, %v2142_v52  ;;  %v1443_v21 = vld [vmem:[#allocation3 + $0x60] sm:$0xc0] }
 0x224   : > { %v1229_v34 = vadd.f32 %v1225_v19, %v1204_v24  ;;  %v1230_v35 = vadd.f32 %v1226_v20, %v1205_v25  ;;  %v1297_v38 = vrot.slane %v1292_v23, %v2140_v51  ;;  %v1301_v0 = vrot.slane %v1292_v23, %v2142_v52  ;;  %v1446_v20 = vld [vmem:[#allocation3 + $0x78] sm:$0x1] }
 0x225   : > { %v1258_v40 = vsel %vm1040_vm2, %v1256_v26, %v1257_v29  ;;  %v1261_v41 = vsel %vm1040_vm2, %v1259_v27, %v1260_v30  ;;  %v1281_v42 = vmul.f32 %v1274_v31, %v1266_v33  ;;  %v1282_v43 = vmul.f32 %v1278_v32, %v1267_v28  ;;  %v1445_v26 = vld [vmem:[#allocation3 + $0x70] sm:$0x1]  ;;  %v1481_v33 = vld [vmem:[#allocation4 + $0x23] ss:$8 sm:$0x3] }
 0x226   : > { %v1264_v50 = vadd.f32 %v1258_v40, %v1229_v34  ;;  %v1265_v53 = vadd.f32 %v1261_v41, %v1230_v35  ;;  %v1304_v54 = vmul.f32 %v1297_v38, %v2152_v14  ;;  %v1305_v55 = vmul.f32 %v1301_v0, %v2150_v9  ;;  %v1344_v14 = vld [vmem:[#allocation3 + $0x58] sm:$0x1c]  ;;  %v1343_v9 = vld [vmem:[#allocation3 + $0x50] sm:$0x1c] }
 0x227   : > { %v1285_v56 = vrot.slane %v1281_v42, 5  ;;  %v1286_v57 = vrot.slane %v1282_v43, 5  ;;  %v1318_v58 = vrot.slane %v1313_v39, %v2140_v51  ;;  %v1322_v59 = vrot.slane %v1313_v39, %v2142_v52  ;;  %v1506_v34 = vld [vmem:[#allocation4 + $0x24] ss:$8 sm:$0x3] }
 0x228   : > { %v1351_v63 = vrot.slane %v1346_v44, %v2140_v51  ;;  %v1355_v1 = vrot.slane %v1346_v44, %v2142_v52  ;;  %v1376_v2 = vrot.slane %v1371_v47, %v2140_v51  ;;  %v1380_v3 = vrot.slane %v1371_v47, %v2142_v52  ;;  %v1527_v41 = vld [vmem:[#allocation4 + $0x25] ss:$8 sm:$0x3] }
 0x229   : > { %v1289_v5 = vadd.f32 %v1285_v56, %v1264_v50  ;;  %v1290_v6 = vadd.f32 %v1286_v57, %v1265_v53  ;;  %v1325_v7 = vmul.f32 %v1318_v58, %v1308_v62  ;;  %v1326_v11 = vmul.f32 %v1322_v59, %v1309_v60 }
 0x22a   : > { %v1327_v16 = vmul.f32 %v1318_v58, %v1310_v4  ;;  %v1328_v17 = vmul.f32 %v1322_v59, %v1311_v61  ;;  %v1358_v18 = vmul.f32 %v1351_v63, %v1343_v9  ;;  %v1359_v19 = vmul.f32 %v1355_v1, %v1344_v14  ;;  %v1479_v58 = vld [vmem:[#allocation3 + $0x78] sm:$0xe]  ;;  %v1504_v59 = vld [vmem:[#allocation3 + $0x78] sm:$0x70]  ;;  %v1523_v1 = vld [vmem:[#allocation3 + $0x78] sm:$0x80] }
 0x22b   : > { %v1306_v22 = vadd.f32 %v1304_v54, %v1289_v5  ;;  %v1307_v23 = vadd.f32 %v1305_v55, %v1290_v6  ;;  %v1333_v24 = vrot.slane %v1325_v7, 3  ;;  %v1336_v25 = vrot.slane %v1326_v11, 3  ;;  %v1525_v5 = vld [vmem:[#allocation3 + $0x88] sm:$0x3]  ;;  %v1503_v6 = vld [vmem:[#allocation3 + $0x70] sm:$0x70] }
 0x22c   : > { %v1437_v27 = vrot.slane %v2178_v45, 7  ;;  %v1438_v28 = vrot.slane %v2180_v46, 7  ;;  %v1334_v29 = vrot.slane %v1327_v16, 3  ;;  %v1337_v30 = vrot.slane %v1328_v17, 3  ;;  %v1522_v7 = vld [vmem:[#allocation3 + $0x70] sm:$0x80] }
 0x22d   : > { %v1460_v31 = vmul.f32 %v2191_v8, %v1443_v21  ;;  %v1461_v32 = vmul.f32 %v2194_v10, %v1444_v15  ;;  %v1383_v35 = vmul.f32 %v1376_v2, %v1368_v13  ;;  %v1384_v38 = vmul.f32 %v1380_v3, %v1369_v12  ;;  %v1478_v2 = vld [vmem:[#allocation3 + $0x70] sm:$0xe]  ;;  %v1524_v16 = vld [vmem:[#allocation3 + $0x80] sm:$0x3] }
 0x22e   : > { %v1462_v0 = vmul.f32 %v2191_v8, %v1445_v26  ;;  %v1463_v39 = vmul.f32 %v2194_v10, %v1446_v20  ;;  %v1335_v40 = vsel %vm1120_vm8, %v1333_v24, %v1334_v29  ;;  %v1338_v45 = vsel %vm1120_vm8, %v1336_v25, %v1337_v30  ;;  %v1560_v8 = vld [vmem:[#allocation4 + $0x26] ss:$8 sm:$0x3]  ;;  %v1558_v20 = vld [vmem:[#allocation3 + $0x88] sm:$0x1c] }
 0x22f   : > { %v1341_v46 = vadd.f32 %v1335_v40, %v1306_v22  ;;  %v1342_v42 = vadd.f32 %v1338_v45, %v1307_v23  ;;  %v1362_v43 = vrot.slane %v1358_v18, 6  ;;  %v1363_v44 = vrot.slane %v1359_v19, 6  ;;  %v1557_v19 = vld [vmem:[#allocation3 + $0x80] sm:$0x1c] }
 0x230   : > { %v1486_v47 = vrot.slane %v1481_v33, %v2140_v51  ;;  %v1490_v50 = vrot.slane %v1481_v33, %v2142_v52  ;;  %v1511_v53 = vrot.slane %v1506_v34, %v2140_v51  ;;  %v1515_v54 = vrot.slane %v1506_v34, %v2142_v52  ;;  %v1585_v29 = vld [vmem:[#allocation4 + $0x27] ss:$8 sm:$0x3] }
 0x231   : > { %v1366_v55 = vadd.f32 %v1362_v43, %v1341_v46  ;;  %v1367_v10 = vadd.f32 %v1363_v44, %v1342_v42  ;;  %v1387_v56 = vrot.slane %v1383_v35, 1  ;;  %v1388_v57 = vrot.slane %v1384_v38, 1  ;;  %v1583_v44 = vld [vmem:[#allocation3 + $0x88] sm:$0xe0] }
 0x232   : > { %v1468_v60 = vrot.slane %v1460_v31, 2  ;;  %v1469_v61 = vrot.slane %v1462_v0, 2  ;;  %v1532_v62 = vrot.slane %v1527_v41, %v2140_v51  ;;  %v1536_v63 = vrot.slane %v1527_v41, %v2142_v52 }
 0x233   : > { %v1471_v3 = vrot.slane %v1461_v32, 2  ;;  %v1472_v14 = vrot.slane %v1463_v39, 2  ;;  %v1391_v4 = vadd.f32 %v1387_v56, %v1366_v55  ;;  %v1392_v9 = vadd.f32 %v1388_v57, %v1367_v10  ;;  %v1608_v55 = vld [vmem:[#allocation3 + $0x98] sm:$0x7]  ;;  %v1607_v10 = vld [vmem:[#allocation3 + $0x90] sm:$0x7] }
 0x234   : > { %v1493_v11 = vmul.f32 %v1486_v47, %v1478_v2  ;;  %v1494_v12 = vmul.f32 %v1490_v50, %v1479_v58  ;;  %v1565_v13 = vrot.slane %v1560_v8, %v2140_v51  ;;  %v1569_v15 = vrot.slane %v1560_v8, %v2142_v52  ;;  %v1582_v47 = vld [vmem:[#allocation3 + $0x80] sm:$0xe0] }
 0x235   : > { %v1518_v17 = vmul.f32 %v1511_v53, %v1503_v6  ;;  %v1519_v18 = vmul.f32 %v1515_v54, %v1504_v59  ;;  %v1416_v21 = vadd.f32 %v1412_v48, %v1391_v4  ;;  %v1417_v22 = vadd.f32 %v1413_v49, %v1392_v9 }
 0x236   : > { %v1539_v23 = vmul.f32 %v1532_v62, %v1522_v7  ;;  %v1540_v24 = vmul.f32 %v1536_v63, %v1523_v1  ;;  %v1541_v25 = vmul.f32 %v1532_v62, %v1524_v16  ;;  %v1542_v26 = vmul.f32 %v1536_v63, %v1525_v5 }
 0x237   : > { %v1470_v30 = vsel %vm1040_vm2, %v1468_v60, %v1469_v61  ;;  %v1473_v31 = vsel %vm1040_vm2, %v1471_v3, %v1472_v14  ;;  %v1441_v32 = vadd.f32 %v1437_v27, %v1416_v21  ;;  %v1442_v33 = vadd.f32 %v1438_v28, %v1417_v22 }
 0x238   : > { %v1497_v34 = vrot.slane %v1493_v11, 5  ;;  %v1498_v35 = vrot.slane %v1494_v12, 5  ;;  %v1572_v38 = vmul.f32 %v1565_v13, %v1557_v19  ;;  %v1573_v0 = vmul.f32 %v1569_v15, %v1558_v20 }
 0x239   : > { %v1590_v48 = vrot.slane %v1585_v29, %v2140_v51  ;;  %v1594_v37 = vrot.slane %v1585_v29, %v2142_v52  ;;  %v1476_v49 = vadd.f32 %v1470_v30, %v1441_v32  ;;  %v1477_v39 = vadd.f32 %v1473_v31, %v1442_v33 }
 0x23a   : > { %v1547_v40 = vrot.slane %v1539_v23, 3  ;;  %v1548_v45 = vrot.slane %v1541_v25, 3  ;;  %v1550_v41 = vrot.slane %v1540_v24, 3  ;;  %v1551_v46 = vrot.slane %v1542_v26, 3 }
 0x23b   : > { %v1615_v42 = vrot.slane %v1610_v36, %v2140_v51  ;;  %v1619_v27 = vrot.slane %v1610_v36, %v2142_v52  ;;  %v1501_v28 = vadd.f32 %v1497_v34, %v1476_v49  ;;  %v1502_v43 = vadd.f32 %v1498_v35, %v1477_v39 }
 0x23c   : > { %v1597_v50 = vmul.f32 %v1590_v48, %v1582_v47  ;;  %v1598_v53 = vmul.f32 %v1594_v37, %v1583_v44  ;;  %v1549_v56 = vsel %vm1120_vm8, %v1547_v40, %v1548_v45  ;;  %v1552_v57 = vsel %vm1120_vm8, %v1550_v41, %v1551_v46 }
 0x23d   : > { %v1520_v54 = vadd.f32 %v1518_v17, %v1501_v28  ;;  %v1521_v8 = vadd.f32 %v1519_v18, %v1502_v43  ;;  %v1576_v58 = vrot.slane %v1572_v38, 6  ;;  %v1577_v59 = vrot.slane %v1573_v0, 6 }
 0x23e   : > { %v1622_v51 = vmul.f32 %v1615_v42, %v1607_v10  ;;  %v1623_v60 = vmul.f32 %v1619_v27, %v1608_v55  ;;  %v1601_v62 = vrot.slane %v1597_v50, 1  ;;  %v1602_v63 = vrot.slane %v1598_v53, 1 }
 0x23f   : > { %v1555_v52 = vadd.f32 %v1549_v56, %v1520_v54  ;;  %v1556_v61 = vadd.f32 %v1552_v57, %v1521_v8 }
 0x240   : > { %v1626_v3 = vrot.slane %v1622_v51, 4  ;;  %v1627_v14 = vrot.slane %v1623_v60, 4 }
 0x241   : > { %v1580_v1 = vadd.f32 %v1576_v58, %v1555_v52  ;;  %v1581_v2 = vadd.f32 %v1577_v59, %v1556_v61 }
 0x243   : > { %v1605_v4 = vadd.f32 %v1601_v62, %v1580_v1  ;;  %v1606_v9 = vadd.f32 %v1602_v63, %v1581_v2 }
 0x245   : > { %v1630_v5 = vadd.f32 %v1626_v3, %v1605_v4  ;;  %v1631_v6 = vadd.f32 %v1627_v14, %v1606_v9 }
 0x247   : > { %v1634_v7 = vcombine.high %v1630_v5, %v1631_v6 }
 0x249   : > { %1636 = vst [vmem:[%s300_s11] sm:$0x77] %v1634_v7 }
 0x24a PF: > { %s14_s19 = sadd.s32 1, %s1936_s19   ;;  %s2262_s15 = smov %s1928_s17 }
 0x24b   : > { %p11_p9 = scmp.ge.s32.totalorder %s14_s19, 6   ;;  %s2263_s16 = smov %s1932_s18 }
 0x24c   : > { %s2264_s17 = smov %s2267_s20  ;;  %s2265_s18 = smov %s2271_s21 }
 0x24d   :  { %13 = sbr.rel (!%p11_p9) target bundleno = 3 (0x3), region = 93 }

</bundles_post_ra>
